<compile_context>
chip_gen: v6e
topology: v6e:2x2x1
jax: 0.10.0
libtpu: 0.0.40
codegen_flags: <defaults>
</compile_context>

<pallas_src>
import functools

import jax
import jax.numpy as jnp
from jax.experimental import pallas as pl
from jax.experimental.pallas import tpu as pltpu

EPS = 1e-5
NEG_SLOPE = 0.01  # LeakyReLU negative_slope

# Tap order k = kh*3 + kw — must match the (9, Cout, Cin) weight layout and
# the host-built mask rows (center tap has no mask).
_TAPS = tuple((kh - 1, kw - 1) for kh in range(3) for kw in range(3))


# ----------------------------------------------------------------------------
# kernel
# ----------------------------------------------------------------------------
def _conv3x3_accum(x, w_ref, masks, W, roll_sign):
    """3x3 'same' conv on a channels-major, lane-flattened image.

    x      : (C, L)    compute dtype (bf16/f32), L = NB*H*W  (lane-dense)
    w_ref  : Ref (9, Cout, C) compute dtype, BN scale pre-folded
    masks  : (8, L)    compute dtype, one row per non-center tap (1 = valid)
    returns: (Cout, L) float32
    """
    _, L = x.shape
    acc = None
    mi = 0
    for k, (dh, dw) in enumerate(_TAPS):
        off = dh * W + dw                       # flat-index offset of this tap
        # in-register halo: tap[:, p] = x[:, p + off]  (XLU rotate, jnp.roll semantics)
        t = x if off == 0 else pltpu.roll(x, (roll_sign * off) % L, 1)
        if (dh, dw) != (0, 0):
            # zero contributions whose source pixel lies outside the image
            t = t * masks[mi:mi + 1, :]
            mi += 1
        p = jnp.dot(w_ref[k], t, preferred_element_type=jnp.float32)
        acc = p if acc is None else acc + p     # 9 accumulating MXU matmuls
    return acc


def double_conv_kernel(x_ref, m_ref, w1_ref, t1_ref, w2_ref, t2_ref, o_ref, *,
                       W, roll_sign):
    """Fused ConvDropoutNormNonlin x2 (eval mode) for one batch group."""
    masks = m_ref[...]                          # (8, L): loaded once, reused by both convs
    x = x_ref[0]                                # (Cin_p, L) compute dtype

    y = _conv3x3_accum(x, w1_ref, masks, W, roll_sign)     # (Cout, L) f32
    y = y + t1_ref[...]                         # conv bias + BN(eval) shift (scale in weights)
    y = jnp.where(y >= 0, y, NEG_SLOPE * y)     # LeakyReLU(0.01); Dropout(eval) = identity

    y = _conv3x3_accum(y.astype(x.dtype), w2_ref, masks, W, roll_sign)
    y = y + t2_ref[...]
    y = jnp.where(y >= 0, y, NEG_SLOPE * y)

    o_ref[0] = y                                # lane-dense f32 store


# ----------------------------------------------------------------------------
# host-side helpers
# ----------------------------------------------------------------------------
def _round_up(x, m):
    return (x + m - 1) // m * m


def _boundary_masks(H, W, nb):
    """(8, nb*H*W) {0,1} masks, one row per non-center 3x3 tap (host, once)."""
    pos = jnp.arange(H * W, dtype=jnp.int32)
    row, col = pos // W, pos % W
    rows = []
    for dh, dw in _TAPS:
        if (dh, dw) == (0, 0):
            continue
        valid = jnp.ones((H * W,), jnp.bool_)
        if dh < 0:
            valid = valid & (row >= -dh)
        if dh > 0:
            valid = valid & (row < H - dh)
        if dw < 0:
            valid = valid & (col >= -dw)
        if dw > 0:
            valid = valid & (col < W - dw)
        rows.append(valid)
    m = jnp.stack(rows, 0).astype(jnp.float32)              # (8, H*W)
    return jnp.tile(m, (1, nb))                              # (8, nb*H*W)


def _fold_params(w_oihw, b, g, be, rm, rv, cin_pad, compute_dtype):
    """Fold conv bias + eval-mode BN: scale into weights, rest into a shift."""
    cout, cin = w_oihw.shape[0], w_oihw.shape[1]
    scale = g / jnp.sqrt(rv + EPS)                                   # (Cout,)
    shift = ((b - rm) * scale + be).astype(jnp.float32)              # (Cout,)
    w = (w_oihw * scale[:, None, None, None]).astype(jnp.float32)    # BN scale folded
    w = jnp.transpose(w, (2, 3, 0, 1)).reshape(9, cout, cin)         # k = kh*3 + kw
    if cin_pad > cin:
        w = jnp.pad(w, ((0, 0), (0, 0), (0, cin_pad - cin)))
    return w.astype(compute_dtype), shift.reshape(cout, 1)


# ----------------------------------------------------------------------------
# wrapper
# ----------------------------------------------------------------------------
def double_conv_forward(x_nchw, params, *, compute_dtype=jnp.bfloat16,
                        roll_sign=-1, images_per_step=None):
    """DoubleConvDropoutNormNonlin.forward — NCHW in, NCHW out (like PyTorch).

    compute_dtype   : MXU operand dtype (bf16 default; f32 for bit-tight checks)
    roll_sign       : -1 == jnp.roll semantics for pltpu.roll (documented)
    images_per_step : batch images stacked along lanes per grid step
                      (default: all N in one step — best for single-TC chips;
                       pass N//2 to use both v7x TensorCores when N >= 2)
    """
    n, cin, H, W = x_nchw.shape
    cout = params["w1"].shape[0]
    hw = H * W
    if images_per_step is None:
        images_per_step = n
    assert n % images_per_step == 0, (n, images_per_step)
    nb = images_per_step
    g = n // nb
    L = nb * hw

    # Layout assumptions this kernel is tuned for (lane-dense stores, roll wrap
    # hidden by the boundary masks, sublane-tiled channel axis).
    assert hw % 128 == 0, "H*W must be a multiple of 128 (lane tile)"
    assert cout % 8 == 0, "Cout must be a multiple of 8 (f32 sublane tile)"
    cin_p = _round_up(cin, 8)

    # (N,Cin,H,W) -> (G, Cin_p, NB*HW): channels on sublanes, batch*space lane-dense.
    x_g = x_nchw.astype(jnp.float32).reshape(g, nb, cin, hw)
    x_g = x_g.transpose(0, 2, 1, 3).reshape(g, cin, L)
    if cin_p > cin:
        x_g = jnp.pad(x_g, ((0, 0), (0, cin_p - cin), (0, 0)))
    x_g = x_g.astype(compute_dtype)

    masks = _boundary_masks(H, W, nb).astype(compute_dtype)          # (8, L)

    w1m, t1 = _fold_params(params["w1"], params["b1"], params["g1"], params["be1"],
                           params["rm1"], params["rv1"], cin_p, compute_dtype)
    w2m, t2 = _fold_params(params["w2"], params["b2"], params["g2"], params["be2"],
                           params["rm2"], params["rv2"], cout, compute_dtype)

    kernel = functools.partial(double_conv_kernel, W=W, roll_sign=roll_sign)

    itemsize = jnp.dtype(compute_dtype).itemsize
    flops = 2 * n * hw * 9 * (cin_p * cout + cout * cout)
    bytes_accessed = (itemsize * (x_g.size + masks.size + w1m.size + w2m.size)
                      + 4 * (g * cout * L + t1.size + t2.size))

    out = pl.pallas_call(
        kernel,
        out_shape=jax.ShapeDtypeStruct((g, cout, L), jnp.float32),
        grid=(g,),
        in_specs=[
            pl.BlockSpec((1, cin_p, L), lambda i: (i, 0, 0)),
            pl.BlockSpec((8, L), lambda i: (0, 0)),
            pl.BlockSpec((9, cout, cin_p), lambda i: (0, 0, 0)),
            pl.BlockSpec((cout, 1), lambda i: (0, 0)),
            pl.BlockSpec((9, cout, cout), lambda i: (0, 0, 0)),
            pl.BlockSpec((cout, 1), lambda i: (0, 0)),
        ],
        out_specs=pl.BlockSpec((1, cout, L), lambda i: (i, 0, 0)),
        compiler_params=pltpu.CompilerParams(
            dimension_semantics=("parallel",),
            # raise above the v5e 16 MiB default; bump further if tiles grow
            vmem_limit_bytes=32 * 1024 * 1024),
        cost_estimate=pl.CostEstimate(flops=int(flops), transcendentals=0,
                                      bytes_accessed=int(bytes_accessed)),
    )(x_g, masks, w1m, t1, w2m, t2)

    # (G, Cout, NB*HW) -> (N, Cout, H, W)
    return out.reshape(g, cout, nb, hw).transpose(0, 2, 1, 3).reshape(n, cout, H, W)


# ----------------------------- reference (plain JAX) -------------------------
def _ref_block(x, w_oihw, b, g, be, rm, rv):
    y = jax.lax.conv_general_dilated(
        x, w_oihw, window_strides=(1, 1), padding=((1, 1), (1, 1)),
        dimension_numbers=("NCHW", "OIHW", "NCHW"))
    y = y + b[None, :, None, None]
    y = (y - rm[None, :, None, None]) / jnp.sqrt(rv[None, :, None, None] + EPS)
    y = y * g[None, :, None, None] + be[None, :, None, None]
    return jnp.where(y >= 0, y, NEG_SLOPE * y)


def ref_forward(x_nchw, p):
    y = _ref_block(x_nchw, p["w1"], p["b1"], p["g1"], p["be1"], p["rm1"], p["rv1"])
    y = _ref_block(y, p["w2"], p["b2"], p["g2"], p["be2"], p["rm2"], p["rv2"])
    return y


# ----------------------------------- main ------------------------------------
if __name__ == "__main__":
    key = jax.random.PRNGKey(0)
    ks = jax.random.split(key, 16)

    N, Cin, Cout, H, W = 2, 4, 8, 16, 16

    params = {
        # conv1: Conv2d(Cin, Cout, 3, stride=1, padding=1, bias=True) + BN(eval)
        "w1": 0.1 * jax.random.normal(ks[0], (Cout, Cin, 3, 3), jnp.float32),
        "b1": 0.1 * jax.random.normal(ks[1], (Cout,), jnp.float32),
        "g1": 1.0 + 0.1 * jax.random.normal(ks[2], (Cout,), jnp.float32),
        "be1": 0.1 * jax.random.normal(ks[3], (Cout,), jnp.float32),
        "rm1": 0.1 * jax.random.normal(ks[4], (Cout,), jnp.float32),
        "rv1": 1.0 + 0.1 * jnp.abs(jax.random.normal(ks[5], (Cout,), jnp.float32)),
        # conv2: Conv2d(Cout, Cout, 3, stride=1, padding=1, bias=True) + BN(eval)
        "w2": 0.1 * jax.random.normal(ks[6], (Cout, Cout, 3, 3), jnp.float32),
        "b2": 0.1 * jax.random.normal(ks[7], (Cout,), jnp.float32),
        "g2": 1.0 + 0.1 * jax.random.normal(ks[8], (Cout,), jnp.float32),
        "be2": 0.1 * jax.random.normal(ks[9], (Cout,), jnp.float32),
        "rm2": 0.1 * jax.random.normal(ks[10], (Cout,), jnp.float32),
        "rv2": 1.0 + 0.1 * jnp.abs(jax.random.normal(ks[11], (Cout,), jnp.float32)),
    }

    x = jax.random.normal(ks[12], (N, Cin, H, W), jnp.float32)

    ref = jax.block_until_ready(ref_forward(x, params))

    # pltpu.roll follows jnp.roll semantics (out[i] = x[i - shift]) => sign = -1.
    roll_sign = -1
    out_f32 = jax.block_until_ready(
        double_conv_forward(x, params, compute_dtype=jnp.float32,
                            roll_sign=roll_sign))
    if not bool(jnp.allclose(out_f32, ref, rtol=1e-4, atol=1e-4)):
        # Defensive fallback only: if a Mosaic release ever flips the rotate
        # direction, recompile with the opposite sign (steady-state path has
        # no probe / host sync either way).
        roll_sign = 1
        out_f32 = jax.block_until_ready(
            double_conv_forward(x, params, compute_dtype=jnp.float32,
                                roll_sign=roll_sign))

    assert out_f32.shape == (N, Cout, H, W), out_f32.shape
    err_f32 = float(jnp.max(jnp.abs(out_f32 - ref)))
    assert jnp.allclose(out_f32, ref, rtol=1e-4, atol=1e-4), err_f32

    # Production config: bf16 MXU operands, f32 accumulation (looser tolerance).
    out_bf16 = jax.block_until_ready(
        double_conv_forward(x, params, compute_dtype=jnp.bfloat16,
                            roll_sign=roll_sign))
    err_bf16 = float(jnp.max(jnp.abs(out_bf16 - ref)))
    assert jnp.allclose(out_bf16, ref, rtol=3e-2, atol=3e-2), err_bf16

    print("KERNEL_OK")
</pallas_src>

<mosaic_0001>
module attributes {stable_mosaic.version = 11 : i64} {
  func.func @double_conv_kernel(%arg0: i32, %arg1: memref<1x8x512xf32, #tpu.memory_space<vmem>>, %arg2: memref<8x512xf32, #tpu.memory_space<vmem>>, %arg3: memref<9x8x8xf32, #tpu.memory_space<vmem>>, %arg4: memref<8x1xf32, #tpu.memory_space<vmem>>, %arg5: memref<9x8x8xf32, #tpu.memory_space<vmem>>, %arg6: memref<8x1xf32, #tpu.memory_space<vmem>>, %arg7: memref<1x8x512xf32, #tpu.memory_space<vmem>>) attributes {dimension_semantics = [#tpu.dimension_semantics<parallel>], iteration_bounds = array<i64: 1>, scalar_prefetch = 0 : i64, scratch_operands = 0 : i64, tpu.core_type = #tpu.core_type<tc>, window_params = [{transform_indices = @transform_0, window_bounds = array<i64: 1, 8, 512>}, {pipeline_mode = #tpu.pipeline_mode<synchronous>, transform_indices = @transform_1, window_bounds = array<i64: 8, 512>}, {pipeline_mode = #tpu.pipeline_mode<synchronous>, transform_indices = @transform_2, window_bounds = array<i64: 9, 8, 8>}, {pipeline_mode = #tpu.pipeline_mode<synchronous>, transform_indices = @transform_3, window_bounds = array<i64: 8, 1>}, {pipeline_mode = #tpu.pipeline_mode<synchronous>, transform_indices = @transform_4, window_bounds = array<i64: 9, 8, 8>}, {pipeline_mode = #tpu.pipeline_mode<synchronous>, transform_indices = @transform_5, window_bounds = array<i64: 8, 1>}, {transform_indices = @transform_6, window_bounds = array<i64: 1, 8, 512>}]} {
    %c0 = arith.constant 0 : index
    %c0_0 = arith.constant 0 : index
    %0 = vector.load %arg2[%c0, %c0_0] : memref<8x512xf32, #tpu.memory_space<vmem>>, vector<8x512xf32>
    %c0_1 = arith.constant 0 : index
    %c0_2 = arith.constant 0 : index
    %c0_3 = arith.constant 0 : index
    %1 = vector.load %arg1[%c0_1, %c0_2, %c0_3] : memref<1x8x512xf32, #tpu.memory_space<vmem>>, vector<1x8x512xf32>
    %2 = vector.shape_cast %1 : vector<1x8x512xf32> to vector<8x512xf32>
    %c17_i32 = arith.constant 17 : i32
    %3 = tpu.dynamic_rotate %2 by %c17_i32 dim 1 : vector<8x512xf32>, i32 -> vector<8x512xf32>
    %4 = vector.extract_strided_slice %0 {offsets = [0, 0], sizes = [1, 512], strides = [1, 1]} : vector<8x512xf32> to vector<1x512xf32>
    %5 = vector.broadcast %4 : vector<1x512xf32> to vector<8x512xf32>
    %6 = arith.mulf %3, %5 : vector<8x512xf32>
    %c0_4 = arith.constant 0 : index
    %c0_5 = arith.constant 0 : index
    %c0_6 = arith.constant 0 : index
    %7 = vector.load %arg3[%c0_4, %c0_5, %c0_6] : memref<9x8x8xf32, #tpu.memory_space<vmem>>, vector<1x8x8xf32>
    %8 = vector.shape_cast %7 : vector<1x8x8xf32> to vector<8x8xf32>
    %cst = arith.constant dense<0.000000e+00> : vector<8x512xf32>
    %9 = tpu.matmul %8, %6, %cst {dimension_numbers = #tpu.dot_dimension_numbers<[1], [0], [0], [1], [0, 0, 1, 1], [], []>} : vector<8x8xf32>, vector<8x512xf32>, vector<8x512xf32> -> vector<8x512xf32>
    %c16_i32 = arith.constant 16 : i32
    %10 = tpu.dynamic_rotate %2 by %c16_i32 dim 1 : vector<8x512xf32>, i32 -> vector<8x512xf32>
    %11 = vector.extract_strided_slice %0 {offsets = [1, 0], sizes = [1, 512], strides = [1, 1]} : vector<8x512xf32> to vector<1x512xf32>
    %12 = vector.broadcast %11 : vector<1x512xf32> to vector<8x512xf32>
    %13 = arith.mulf %10, %12 : vector<8x512xf32>
    %c1 = arith.constant 1 : index
    %c0_7 = arith.constant 0 : index
    %c0_8 = arith.constant 0 : index
    %14 = vector.load %arg3[%c1, %c0_7, %c0_8] : memref<9x8x8xf32, #tpu.memory_space<vmem>>, vector<1x8x8xf32>
    %15 = vector.shape_cast %14 : vector<1x8x8xf32> to vector<8x8xf32>
    %cst_9 = arith.constant dense<0.000000e+00> : vector<8x512xf32>
    %16 = tpu.matmul %15, %13, %cst_9 {dimension_numbers = #tpu.dot_dimension_numbers<[1], [0], [0], [1], [0, 0, 1, 1], [], []>} : vector<8x8xf32>, vector<8x512xf32>, vector<8x512xf32> -> vector<8x512xf32>
    %17 = arith.addf %9, %16 : vector<8x512xf32>
    %c15_i32 = arith.constant 15 : i32
    %18 = tpu.dynamic_rotate %2 by %c15_i32 dim 1 : vector<8x512xf32>, i32 -> vector<8x512xf32>
    %19 = vector.extract_strided_slice %0 {offsets = [2, 0], sizes = [1, 512], strides = [1, 1]} : vector<8x512xf32> to vector<1x512xf32>
    %20 = vector.broadcast %19 : vector<1x512xf32> to vector<8x512xf32>
    %21 = arith.mulf %18, %20 : vector<8x512xf32>
    %c2 = arith.constant 2 : index
    %c0_10 = arith.constant 0 : index
    %c0_11 = arith.constant 0 : index
    %22 = vector.load %arg3[%c2, %c0_10, %c0_11] : memref<9x8x8xf32, #tpu.memory_space<vmem>>, vector<1x8x8xf32>
    %23 = vector.shape_cast %22 : vector<1x8x8xf32> to vector<8x8xf32>
    %cst_12 = arith.constant dense<0.000000e+00> : vector<8x512xf32>
    %24 = tpu.matmul %23, %21, %cst_12 {dimension_numbers = #tpu.dot_dimension_numbers<[1], [0], [0], [1], [0, 0, 1, 1], [], []>} : vector<8x8xf32>, vector<8x512xf32>, vector<8x512xf32> -> vector<8x512xf32>
    %25 = arith.addf %17, %24 : vector<8x512xf32>
    %c1_i32 = arith.constant 1 : i32
    %26 = tpu.dynamic_rotate %2 by %c1_i32 dim 1 : vector<8x512xf32>, i32 -> vector<8x512xf32>
    %27 = vector.extract_strided_slice %0 {offsets = [3, 0], sizes = [1, 512], strides = [1, 1]} : vector<8x512xf32> to vector<1x512xf32>
    %28 = vector.broadcast %27 : vector<1x512xf32> to vector<8x512xf32>
    %29 = arith.mulf %26, %28 : vector<8x512xf32>
    %c3 = arith.constant 3 : index
    %c0_13 = arith.constant 0 : index
    %c0_14 = arith.constant 0 : index
    %30 = vector.load %arg3[%c3, %c0_13, %c0_14] : memref<9x8x8xf32, #tpu.memory_space<vmem>>, vector<1x8x8xf32>
    %31 = vector.shape_cast %30 : vector<1x8x8xf32> to vector<8x8xf32>
    %cst_15 = arith.constant dense<0.000000e+00> : vector<8x512xf32>
    %32 = tpu.matmul %31, %29, %cst_15 {dimension_numbers = #tpu.dot_dimension_numbers<[1], [0], [0], [1], [0, 0, 1, 1], [], []>} : vector<8x8xf32>, vector<8x512xf32>, vector<8x512xf32> -> vector<8x512xf32>
    %33 = arith.addf %25, %32 : vector<8x512xf32>
    %c4 = arith.constant 4 : index
    %c0_16 = arith.constant 0 : index
    %c0_17 = arith.constant 0 : index
    %34 = vector.load %arg3[%c4, %c0_16, %c0_17] : memref<9x8x8xf32, #tpu.memory_space<vmem>>, vector<1x8x8xf32>
    %35 = vector.shape_cast %34 : vector<1x8x8xf32> to vector<8x8xf32>
    %cst_18 = arith.constant dense<0.000000e+00> : vector<8x512xf32>
    %36 = tpu.matmul %35, %2, %cst_18 {dimension_numbers = #tpu.dot_dimension_numbers<[1], [0], [0], [1], [0, 0, 1, 1], [], []>} : vector<8x8xf32>, vector<8x512xf32>, vector<8x512xf32> -> vector<8x512xf32>
    %37 = arith.addf %33, %36 : vector<8x512xf32>
    %c511_i32 = arith.constant 511 : i32
    %38 = tpu.dynamic_rotate %2 by %c511_i32 dim 1 : vector<8x512xf32>, i32 -> vector<8x512xf32>
    %39 = vector.extract_strided_slice %0 {offsets = [4, 0], sizes = [1, 512], strides = [1, 1]} : vector<8x512xf32> to vector<1x512xf32>
    %40 = vector.broadcast %39 : vector<1x512xf32> to vector<8x512xf32>
    %41 = arith.mulf %38, %40 : vector<8x512xf32>
    %c5 = arith.constant 5 : index
    %c0_19 = arith.constant 0 : index
    %c0_20 = arith.constant 0 : index
    %42 = vector.load %arg3[%c5, %c0_19, %c0_20] : memref<9x8x8xf32, #tpu.memory_space<vmem>>, vector<1x8x8xf32>
    %43 = vector.shape_cast %42 : vector<1x8x8xf32> to vector<8x8xf32>
    %cst_21 = arith.constant dense<0.000000e+00> : vector<8x512xf32>
    %44 = tpu.matmul %43, %41, %cst_21 {dimension_numbers = #tpu.dot_dimension_numbers<[1], [0], [0], [1], [0, 0, 1, 1], [], []>} : vector<8x8xf32>, vector<8x512xf32>, vector<8x512xf32> -> vector<8x512xf32>
    %45 = arith.addf %37, %44 : vector<8x512xf32>
    %c497_i32 = arith.constant 497 : i32
    %46 = tpu.dynamic_rotate %2 by %c497_i32 dim 1 : vector<8x512xf32>, i32 -> vector<8x512xf32>
    %47 = vector.extract_strided_slice %0 {offsets = [5, 0], sizes = [1, 512], strides = [1, 1]} : vector<8x512xf32> to vector<1x512xf32>
    %48 = vector.broadcast %47 : vector<1x512xf32> to vector<8x512xf32>
    %49 = arith.mulf %46, %48 : vector<8x512xf32>
    %c6 = arith.constant 6 : index
    %c0_22 = arith.constant 0 : index
    %c0_23 = arith.constant 0 : index
    %50 = vector.load %arg3[%c6, %c0_22, %c0_23] : memref<9x8x8xf32, #tpu.memory_space<vmem>>, vector<1x8x8xf32>
    %51 = vector.shape_cast %50 : vector<1x8x8xf32> to vector<8x8xf32>
    %cst_24 = arith.constant dense<0.000000e+00> : vector<8x512xf32>
    %52 = tpu.matmul %51, %49, %cst_24 {dimension_numbers = #tpu.dot_dimension_numbers<[1], [0], [0], [1], [0, 0, 1, 1], [], []>} : vector<8x8xf32>, vector<8x512xf32>, vector<8x512xf32> -> vector<8x512xf32>
    %53 = arith.addf %45, %52 : vector<8x512xf32>
    %c496_i32 = arith.constant 496 : i32
    %54 = tpu.dynamic_rotate %2 by %c496_i32 dim 1 : vector<8x512xf32>, i32 -> vector<8x512xf32>
    %55 = vector.extract_strided_slice %0 {offsets = [6, 0], sizes = [1, 512], strides = [1, 1]} : vector<8x512xf32> to vector<1x512xf32>
    %56 = vector.broadcast %55 : vector<1x512xf32> to vector<8x512xf32>
    %57 = arith.mulf %54, %56 : vector<8x512xf32>
    %c7 = arith.constant 7 : index
    %c0_25 = arith.constant 0 : index
    %c0_26 = arith.constant 0 : index
    %58 = vector.load %arg3[%c7, %c0_25, %c0_26] : memref<9x8x8xf32, #tpu.memory_space<vmem>>, vector<1x8x8xf32>
    %59 = vector.shape_cast %58 : vector<1x8x8xf32> to vector<8x8xf32>
    %cst_27 = arith.constant dense<0.000000e+00> : vector<8x512xf32>
    %60 = tpu.matmul %59, %57, %cst_27 {dimension_numbers = #tpu.dot_dimension_numbers<[1], [0], [0], [1], [0, 0, 1, 1], [], []>} : vector<8x8xf32>, vector<8x512xf32>, vector<8x512xf32> -> vector<8x512xf32>
    %61 = arith.addf %53, %60 : vector<8x512xf32>
    %c495_i32 = arith.constant 495 : i32
    %62 = tpu.dynamic_rotate %2 by %c495_i32 dim 1 : vector<8x512xf32>, i32 -> vector<8x512xf32>
    %63 = vector.extract_strided_slice %0 {offsets = [7, 0], sizes = [1, 512], strides = [1, 1]} : vector<8x512xf32> to vector<1x512xf32>
    %64 = vector.broadcast %63 : vector<1x512xf32> to vector<8x512xf32>
    %65 = arith.mulf %62, %64 : vector<8x512xf32>
    %c8 = arith.constant 8 : index
    %c0_28 = arith.constant 0 : index
    %c0_29 = arith.constant 0 : index
    %66 = vector.load %arg3[%c8, %c0_28, %c0_29] : memref<9x8x8xf32, #tpu.memory_space<vmem>>, vector<1x8x8xf32>
    %67 = vector.shape_cast %66 : vector<1x8x8xf32> to vector<8x8xf32>
    %cst_30 = arith.constant dense<0.000000e+00> : vector<8x512xf32>
    %68 = tpu.matmul %67, %65, %cst_30 {dimension_numbers = #tpu.dot_dimension_numbers<[1], [0], [0], [1], [0, 0, 1, 1], [], []>} : vector<8x8xf32>, vector<8x512xf32>, vector<8x512xf32> -> vector<8x512xf32>
    %69 = arith.addf %61, %68 : vector<8x512xf32>
    %c0_31 = arith.constant 0 : index
    %c0_32 = arith.constant 0 : index
    %70 = vector.load %arg4[%c0_31, %c0_32] : memref<8x1xf32, #tpu.memory_space<vmem>>, vector<8x1xf32>
    %71 = vector.broadcast %70 : vector<8x1xf32> to vector<8x512xf32>
    %72 = arith.addf %69, %71 : vector<8x512xf32>
    %cst_33 = arith.constant 0.000000e+00 : f32
    %73 = vector.broadcast %cst_33 : f32 to vector<8x512xf32>
    %74 = arith.cmpf oge, %72, %73 : vector<8x512xf32>
    %cst_34 = arith.constant 0.00999999977 : f32
    %75 = vector.broadcast %cst_34 : f32 to vector<8x512xf32>
    %76 = arith.mulf %75, %72 : vector<8x512xf32>
    %77 = arith.select %74, %72, %76 : vector<8x512xi1>, vector<8x512xf32>
    %c17_i32_35 = arith.constant 17 : i32
    %78 = tpu.dynamic_rotate %77 by %c17_i32_35 dim 1 : vector<8x512xf32>, i32 -> vector<8x512xf32>
    %79 = vector.extract_strided_slice %0 {offsets = [0, 0], sizes = [1, 512], strides = [1, 1]} : vector<8x512xf32> to vector<1x512xf32>
    %80 = vector.broadcast %79 : vector<1x512xf32> to vector<8x512xf32>
    %81 = arith.mulf %78, %80 : vector<8x512xf32>
    %c0_36 = arith.constant 0 : index
    %c0_37 = arith.constant 0 : index
    %c0_38 = arith.constant 0 : index
    %82 = vector.load %arg5[%c0_36, %c0_37, %c0_38] : memref<9x8x8xf32, #tpu.memory_space<vmem>>, vector<1x8x8xf32>
    %83 = vector.shape_cast %82 : vector<1x8x8xf32> to vector<8x8xf32>
    %cst_39 = arith.constant dense<0.000000e+00> : vector<8x512xf32>
    %84 = tpu.matmul %83, %81, %cst_39 {dimension_numbers = #tpu.dot_dimension_numbers<[1], [0], [0], [1], [0, 0, 1, 1], [], []>} : vector<8x8xf32>, vector<8x512xf32>, vector<8x512xf32> -> vector<8x512xf32>
    %c16_i32_40 = arith.constant 16 : i32
    %85 = tpu.dynamic_rotate %77 by %c16_i32_40 dim 1 : vector<8x512xf32>, i32 -> vector<8x512xf32>
    %86 = vector.extract_strided_slice %0 {offsets = [1, 0], sizes = [1, 512], strides = [1, 1]} : vector<8x512xf32> to vector<1x512xf32>
    %87 = vector.broadcast %86 : vector<1x512xf32> to vector<8x512xf32>
    %88 = arith.mulf %85, %87 : vector<8x512xf32>
    %c1_41 = arith.constant 1 : index
    %c0_42 = arith.constant 0 : index
    %c0_43 = arith.constant 0 : index
    %89 = vector.load %arg5[%c1_41, %c0_42, %c0_43] : memref<9x8x8xf32, #tpu.memory_space<vmem>>, vector<1x8x8xf32>
    %90 = vector.shape_cast %89 : vector<1x8x8xf32> to vector<8x8xf32>
    %cst_44 = arith.constant dense<0.000000e+00> : vector<8x512xf32>
    %91 = tpu.matmul %90, %88, %cst_44 {dimension_numbers = #tpu.dot_dimension_numbers<[1], [0], [0], [1], [0, 0, 1, 1], [], []>} : vector<8x8xf32>, vector<8x512xf32>, vector<8x512xf32> -> vector<8x512xf32>
    %92 = arith.addf %84, %91 : vector<8x512xf32>
    %c15_i32_45 = arith.constant 15 : i32
    %93 = tpu.dynamic_rotate %77 by %c15_i32_45 dim 1 : vector<8x512xf32>, i32 -> vector<8x512xf32>
    %94 = vector.extract_strided_slice %0 {offsets = [2, 0], sizes = [1, 512], strides = [1, 1]} : vector<8x512xf32> to vector<1x512xf32>
    %95 = vector.broadcast %94 : vector<1x512xf32> to vector<8x512xf32>
    %96 = arith.mulf %93, %95 : vector<8x512xf32>
    %c2_46 = arith.constant 2 : index
    %c0_47 = arith.constant 0 : index
    %c0_48 = arith.constant 0 : index
    %97 = vector.load %arg5[%c2_46, %c0_47, %c0_48] : memref<9x8x8xf32, #tpu.memory_space<vmem>>, vector<1x8x8xf32>
    %98 = vector.shape_cast %97 : vector<1x8x8xf32> to vector<8x8xf32>
    %cst_49 = arith.constant dense<0.000000e+00> : vector<8x512xf32>
    %99 = tpu.matmul %98, %96, %cst_49 {dimension_numbers = #tpu.dot_dimension_numbers<[1], [0], [0], [1], [0, 0, 1, 1], [], []>} : vector<8x8xf32>, vector<8x512xf32>, vector<8x512xf32> -> vector<8x512xf32>
    %100 = arith.addf %92, %99 : vector<8x512xf32>
    %c1_i32_50 = arith.constant 1 : i32
    %101 = tpu.dynamic_rotate %77 by %c1_i32_50 dim 1 : vector<8x512xf32>, i32 -> vector<8x512xf32>
    %102 = vector.extract_strided_slice %0 {offsets = [3, 0], sizes = [1, 512], strides = [1, 1]} : vector<8x512xf32> to vector<1x512xf32>
    %103 = vector.broadcast %102 : vector<1x512xf32> to vector<8x512xf32>
    %104 = arith.mulf %101, %103 : vector<8x512xf32>
    %c3_51 = arith.constant 3 : index
    %c0_52 = arith.constant 0 : index
    %c0_53 = arith.constant 0 : index
    %105 = vector.load %arg5[%c3_51, %c0_52, %c0_53] : memref<9x8x8xf32, #tpu.memory_space<vmem>>, vector<1x8x8xf32>
    %106 = vector.shape_cast %105 : vector<1x8x8xf32> to vector<8x8xf32>
    %cst_54 = arith.constant dense<0.000000e+00> : vector<8x512xf32>
    %107 = tpu.matmul %106, %104, %cst_54 {dimension_numbers = #tpu.dot_dimension_numbers<[1], [0], [0], [1], [0, 0, 1, 1], [], []>} : vector<8x8xf32>, vector<8x512xf32>, vector<8x512xf32> -> vector<8x512xf32>
    %108 = arith.addf %100, %107 : vector<8x512xf32>
    %c4_55 = arith.constant 4 : index
    %c0_56 = arith.constant 0 : index
    %c0_57 = arith.constant 0 : index
    %109 = vector.load %arg5[%c4_55, %c0_56, %c0_57] : memref<9x8x8xf32, #tpu.memory_space<vmem>>, vector<1x8x8xf32>
    %110 = vector.shape_cast %109 : vector<1x8x8xf32> to vector<8x8xf32>
    %cst_58 = arith.constant dense<0.000000e+00> : vector<8x512xf32>
    %111 = tpu.matmul %110, %77, %cst_58 {dimension_numbers = #tpu.dot_dimension_numbers<[1], [0], [0], [1], [0, 0, 1, 1], [], []>} : vector<8x8xf32>, vector<8x512xf32>, vector<8x512xf32> -> vector<8x512xf32>
    %112 = arith.addf %108, %111 : vector<8x512xf32>
    %c511_i32_59 = arith.constant 511 : i32
    %113 = tpu.dynamic_rotate %77 by %c511_i32_59 dim 1 : vector<8x512xf32>, i32 -> vector<8x512xf32>
    %114 = vector.extract_strided_slice %0 {offsets = [4, 0], sizes = [1, 512], strides = [1, 1]} : vector<8x512xf32> to vector<1x512xf32>
    %115 = vector.broadcast %114 : vector<1x512xf32> to vector<8x512xf32>
    %116 = arith.mulf %113, %115 : vector<8x512xf32>
    %c5_60 = arith.constant 5 : index
    %c0_61 = arith.constant 0 : index
    %c0_62 = arith.constant 0 : index
    %117 = vector.load %arg5[%c5_60, %c0_61, %c0_62] : memref<9x8x8xf32, #tpu.memory_space<vmem>>, vector<1x8x8xf32>
    %118 = vector.shape_cast %117 : vector<1x8x8xf32> to vector<8x8xf32>
    %cst_63 = arith.constant dense<0.000000e+00> : vector<8x512xf32>
    %119 = tpu.matmul %118, %116, %cst_63 {dimension_numbers = #tpu.dot_dimension_numbers<[1], [0], [0], [1], [0, 0, 1, 1], [], []>} : vector<8x8xf32>, vector<8x512xf32>, vector<8x512xf32> -> vector<8x512xf32>
    %120 = arith.addf %112, %119 : vector<8x512xf32>
    %c497_i32_64 = arith.constant 497 : i32
    %121 = tpu.dynamic_rotate %77 by %c497_i32_64 dim 1 : vector<8x512xf32>, i32 -> vector<8x512xf32>
    %122 = vector.extract_strided_slice %0 {offsets = [5, 0], sizes = [1, 512], strides = [1, 1]} : vector<8x512xf32> to vector<1x512xf32>
    %123 = vector.broadcast %122 : vector<1x512xf32> to vector<8x512xf32>
    %124 = arith.mulf %121, %123 : vector<8x512xf32>
    %c6_65 = arith.constant 6 : index
    %c0_66 = arith.constant 0 : index
    %c0_67 = arith.constant 0 : index
    %125 = vector.load %arg5[%c6_65, %c0_66, %c0_67] : memref<9x8x8xf32, #tpu.memory_space<vmem>>, vector<1x8x8xf32>
    %126 = vector.shape_cast %125 : vector<1x8x8xf32> to vector<8x8xf32>
    %cst_68 = arith.constant dense<0.000000e+00> : vector<8x512xf32>
    %127 = tpu.matmul %126, %124, %cst_68 {dimension_numbers = #tpu.dot_dimension_numbers<[1], [0], [0], [1], [0, 0, 1, 1], [], []>} : vector<8x8xf32>, vector<8x512xf32>, vector<8x512xf32> -> vector<8x512xf32>
    %128 = arith.addf %120, %127 : vector<8x512xf32>
    %c496_i32_69 = arith.constant 496 : i32
    %129 = tpu.dynamic_rotate %77 by %c496_i32_69 dim 1 : vector<8x512xf32>, i32 -> vector<8x512xf32>
    %130 = vector.extract_strided_slice %0 {offsets = [6, 0], sizes = [1, 512], strides = [1, 1]} : vector<8x512xf32> to vector<1x512xf32>
    %131 = vector.broadcast %130 : vector<1x512xf32> to vector<8x512xf32>
    %132 = arith.mulf %129, %131 : vector<8x512xf32>
    %c7_70 = arith.constant 7 : index
    %c0_71 = arith.constant 0 : index
    %c0_72 = arith.constant 0 : index
    %133 = vector.load %arg5[%c7_70, %c0_71, %c0_72] : memref<9x8x8xf32, #tpu.memory_space<vmem>>, vector<1x8x8xf32>
    %134 = vector.shape_cast %133 : vector<1x8x8xf32> to vector<8x8xf32>
    %cst_73 = arith.constant dense<0.000000e+00> : vector<8x512xf32>
    %135 = tpu.matmul %134, %132, %cst_73 {dimension_numbers = #tpu.dot_dimension_numbers<[1], [0], [0], [1], [0, 0, 1, 1], [], []>} : vector<8x8xf32>, vector<8x512xf32>, vector<8x512xf32> -> vector<8x512xf32>
    %136 = arith.addf %128, %135 : vector<8x512xf32>
    %c495_i32_74 = arith.constant 495 : i32
    %137 = tpu.dynamic_rotate %77 by %c495_i32_74 dim 1 : vector<8x512xf32>, i32 -> vector<8x512xf32>
    %138 = vector.extract_strided_slice %0 {offsets = [7, 0], sizes = [1, 512], strides = [1, 1]} : vector<8x512xf32> to vector<1x512xf32>
    %139 = vector.broadcast %138 : vector<1x512xf32> to vector<8x512xf32>
    %140 = arith.mulf %137, %139 : vector<8x512xf32>
    %c8_75 = arith.constant 8 : index
    %c0_76 = arith.constant 0 : index
    %c0_77 = arith.constant 0 : index
    %141 = vector.load %arg5[%c8_75, %c0_76, %c0_77] : memref<9x8x8xf32, #tpu.memory_space<vmem>>, vector<1x8x8xf32>
    %142 = vector.shape_cast %141 : vector<1x8x8xf32> to vector<8x8xf32>
    %cst_78 = arith.constant dense<0.000000e+00> : vector<8x512xf32>
    %143 = tpu.matmul %142, %140, %cst_78 {dimension_numbers = #tpu.dot_dimension_numbers<[1], [0], [0], [1], [0, 0, 1, 1], [], []>} : vector<8x8xf32>, vector<8x512xf32>, vector<8x512xf32> -> vector<8x512xf32>
    %144 = arith.addf %136, %143 : vector<8x512xf32>
    %c0_79 = arith.constant 0 : index
    %c0_80 = arith.constant 0 : index
    %145 = vector.load %arg6[%c0_79, %c0_80] : memref<8x1xf32, #tpu.memory_space<vmem>>, vector<8x1xf32>
    %146 = vector.broadcast %145 : vector<8x1xf32> to vector<8x512xf32>
    %147 = arith.addf %144, %146 : vector<8x512xf32>
    %cst_81 = arith.constant 0.000000e+00 : f32
    %148 = vector.broadcast %cst_81 : f32 to vector<8x512xf32>
    %149 = arith.cmpf oge, %147, %148 : vector<8x512xf32>
    %cst_82 = arith.constant 0.00999999977 : f32
    %150 = vector.broadcast %cst_82 : f32 to vector<8x512xf32>
    %151 = arith.mulf %150, %147 : vector<8x512xf32>
    %152 = arith.select %149, %147, %151 : vector<8x512xi1>, vector<8x512xf32>
    %c0_83 = arith.constant 0 : index
    %c0_84 = arith.constant 0 : index
    %c0_85 = arith.constant 0 : index
    %153 = vector.load %arg7[%c0_83, %c0_84, %c0_85] : memref<1x8x512xf32, #tpu.memory_space<vmem>>, vector<1x8x512xf32>
    %154 = vector.shape_cast %153 : vector<1x8x512xf32> to vector<8x512xf32>
    %155 = vector.shape_cast %152 : vector<8x512xf32> to vector<1x8x512xf32>
    tpu.vector_store %arg7[%c0_83, %c0_84, %c0_85], %155 {strides = array<i32>} : memref<1x8x512xf32, #tpu.memory_space<vmem>>, vector<1x8x512xf32>,
    return
  }
  func.func @transform_0(%arg0: i32) -> (i32, i32, i32) {
    %c0_i32 = arith.constant 0 : i32
    %c0_i32_0 = arith.constant 0 : i32
    %c0_i32_1 = arith.constant 0 : i32
    return %arg0, %c0_i32, %c0_i32_0 : i32, i32, i32
  }
  func.func @transform_1(%arg0: i32) -> (i32, i32) {
    %c0_i32 = arith.constant 0 : i32
    %c0_i32_0 = arith.constant 0 : i32
    %c0_i32_1 = arith.constant 0 : i32
    return %c0_i32, %c0_i32_0 : i32, i32
  }
  func.func @transform_2(%arg0: i32) -> (i32, i32, i32) {
    %c0_i32 = arith.constant 0 : i32
    %c0_i32_0 = arith.constant 0 : i32
    %c0_i32_1 = arith.constant 0 : i32
    %c0_i32_2 = arith.constant 0 : i32
    return %c0_i32, %c0_i32_0, %c0_i32_1 : i32, i32, i32
  }
  func.func @transform_3(%arg0: i32) -> (i32, i32) {
    %c0_i32 = arith.constant 0 : i32
    %c0_i32_0 = arith.constant 0 : i32
    %c0_i32_1 = arith.constant 0 : i32
    return %c0_i32, %c0_i32_0 : i32, i32
  }
  func.func @transform_4(%arg0: i32) -> (i32, i32, i32) {
    %c0_i32 = arith.constant 0 : i32
    %c0_i32_0 = arith.constant 0 : i32
    %c0_i32_1 = arith.constant 0 : i32
    %c0_i32_2 = arith.constant 0 : i32
    return %c0_i32, %c0_i32_0, %c0_i32_1 : i32, i32, i32
  }
  func.func @transform_5(%arg0: i32) -> (i32, i32) {
    %c0_i32 = arith.constant 0 : i32
    %c0_i32_0 = arith.constant 0 : i32
    %c0_i32_1 = arith.constant 0 : i32
    return %c0_i32, %c0_i32_0 : i32, i32
  }
  func.func @transform_6(%arg0: i32) -> (i32, i32, i32) {
    %c0_i32 = arith.constant 0 : i32
    %c0_i32_0 = arith.constant 0 : i32
    %c0_i32_1 = arith.constant 0 : i32
    return %arg0, %c0_i32, %c0_i32_0 : i32, i32, i32
  }
}

</mosaic_0001>

<bundles_post_ra>
// kernel: tpu_custom_call.1
= control target key start
LH: loop header
LB: loop body
LE: loop exit
PB: predicated region body
PF: predicated region fallthrough
CT: control target
= control target key end

     0   :  { %s3275_s25 = smov 16   ;;  %v3955_v4 = vmov 0.0   ;;  %s3948_s0 = inlined_call_operand.vmem [shape: f32[1,8,512], index: 0, kind: input, shape index: {}]   ;;  %s3949_s1 = inlined_call_operand.vmem [shape: f32[8,512], index: 1, kind: input, shape index: {}]   ;;  %s3950_s2 = inlined_call_operand.vmem [shape: f32[9,8,8], index: 2, kind: input, shape index: {}]   ;;  %s3951_s3 = inlined_call_operand.vmem [shape: f32[8,1], index: 3, kind: input, shape index: {}]   ;;  %s3952_s4 = inlined_call_operand.vmem [shape: f32[9,8,8], index: 4, kind: input, shape index: {}]   ;;  %s3953_s5 = inlined_call_operand.vmem [shape: f32[8,1], index: 5, kind: input, shape index: {}]   ;;  %s3954_s6 = inlined_call_operand.hbm [shape: f32[1,8,512], index: 6, kind: output, shape index: {}]  }
   0x1   :  { %v3324_v0 = vld [vmem:[%s3948_s0 + $0x10] sm:$0xff]  ;;  %v3329_v1 = vld [vmem:[%s3948_s0] sm:$0xff]  ;;  %v3338_v2 = vld [vmem:[%s3948_s0 + $0x18] sm:$0xff]  ;;  %171 = vmatprep.mubr.f32.mxu0 %v3955_v4  ;;  %242 = vmatprep.mubr.f32.mxu1 %v3955_v4 }
   0x2   :  { %72 = vrot.lane.b32.xlu1 %v3324_v0, %s3275_s25  ;;  %68 = vrot.lane.b32.xlu0 %v3329_v1, %s3275_s25  ;;  %v3343_v3 = vld [vmem:[%s3948_s0 + $0x8] sm:$0xff] }
   0x3   :  { %11 = vsyncpa [#allocation3], 0  ;;  %s3277_s30 = smov 17   ;;  %s3278_s0 = smov 15   ;;  %v3283_v5 = vmov 0   ;;  %v1649_v6 = vld [vmem:[%s3951_s3] sm:$0xff]  ;;  %v40_v7 = vlaneseq }
   0x4   :  { %s3279_s7 = smov 1   ;;  %s3280_s8 = smov 127   ;;  %3252 = vset.pattern.permute.xlu0 %v3283_v5  ;;  %v3417_v10 = vld [vmem:[%s3949_s1 + $0x8] sm:$0xff]  ;;  %v3423_v12 = vld [vmem:[%s3949_s1 + $0x18] sm:$0xff]  ;;  %v3428_v13 = vld [vmem:[%s3949_s1] sm:$0xff]  ;;  %vm103_vm2 = vcmask 64512  }
   0x5   :  { %s3281_s9 = smov 113   ;;  %s3282_s10 = smov 112   ;;  %v3410_v8 = vshrl.u32 %v40_v7, 7  ;;  %v3412_v9 = vand.u32 127, %v40_v7  ;;  %v3433_v14 = vld [vmem:[%s3949_s1 + $0x10] sm:$0xff]  ;;  %v3189_v33 = vld [vmem:[%s3950_s2 + $0x8] sm:$0xff] }
   0x6   :  { %74 = vrot.lane.b32.xlu1 %v3338_v2, %s3275_s25  ;;  %70 = vrot.lane.b32.xlu0 %v3343_v3, %s3275_s25  ;;  %s3284_s11 = smov 111   ;;  %v67_v51 = vld [vmem:[%s3950_s2] sm:$0xff] }
   0x7   :  { %v83_v11 = vsub.s32 1, %v3410_v8  ;;  %v49_v17 = vsub.s32 0, %v3410_v8  ;;  %vm76_vm0 = vcmp.lt.s32.totalorder %v3412_v9, 16  ;;  %vm42_vm1 = vcmp.lt.s32.totalorder %v3412_v9, 17 }
   0x8   :  { %v409_v41 = vsub.s32 2, %v3410_v8  ;;  %vm402_vm3 = vcmp.lt.s32.totalorder %v3412_v9, 15  ;;  %v593_v59 = vsub.s32 3, %v3410_v8  ;;  %vm586_vm4 = vcmp.lt.s32.totalorder %v3412_v9, 1 }
   0x9   :  { %v3438_v18 = vrot.slane %v3417_v10, %v83_v11  ;;  %v3441_v19 = vrot.slane %v3423_v12, %v83_v11  ;;  %v3444_v20 = vrot.slane %v3428_v13, %v83_v11  ;;  %v3447_v21 = vrot.slane %v3433_v14, %v83_v11 }
   0xa   :  { %34 = vrot.lane.b32.xlu1 %v3343_v3, %s3277_s30  ;;  %32 = vrot.lane.b32.xlu0 %v3329_v1, %s3277_s30  ;;  %v3451_v24 = vrot.slane %v3417_v10, %v49_v17  ;;  %v3471_v37 = vrot.slane %v3428_v13, %v49_v17  ;;  %v3475_v39 = vrot.slane %v3433_v14, %v49_v17  ;;  %vm921_vm5 = vcmp.lt.s32.totalorder %v3412_v9, 127 }
   0xb   :  { %v3478_v40 = vrot.slane %v3423_v12, %v49_v17  ;;  %v3496_v50 = vrot.slane %v3417_v10, %v409_v41  ;;  %v3504_v55 = vrot.slane %v3428_v13, %v409_v41  ;;  %v3509_v57 = vrot.slane %v3433_v14, %v409_v41 }
   0xc   :  { %v3512_v58 = vrot.slane %v3423_v12, %v409_v41  ;;  %v928_v41 = vsub.s32 4, %v3410_v8  ;;  %vm1105_vm6 = vcmp.lt.s32.totalorder %v3412_v9, 113  ;;  %vm1289_vm7 = vcmp.lt.s32.totalorder %v3412_v9, 112 }
   0xd   :  { %vm1473_vm8 = vcmp.lt.s32.totalorder %v3412_v9, 111 }
   0xe   :  { %38 = vrot.lane.b32.xlu1 %v3338_v2, %s3277_s30  ;;  %36 = vrot.lane.b32.xlu0 %v3324_v0, %s3277_s30 }
  0x12   :  { %396 = vrot.lane.b32.xlu1 %v3343_v3, %s3278_s0  ;;  %394 = vrot.lane.b32.xlu0 %v3329_v1, %s3278_s0 }
  0x16   :  { %400 = vrot.lane.b32.xlu1 %v3338_v2, %s3278_s0  ;;  %398 = vrot.lane.b32.xlu0 %v3324_v0, %s3278_s0 }
  0x1a   :  { %580 = vrot.lane.b32.xlu1 %v3343_v3, %s3279_s7  ;;  %578 = vrot.lane.b32.xlu0 %v3329_v1, %s3279_s7 }
  0x1e   :  { %584 = vrot.lane.b32.xlu1 %v3338_v2, %s3279_s7  ;;  %582 = vrot.lane.b32.xlu0 %v3324_v0, %s3279_s7 }
  0x22   :  { %915 = vrot.lane.b32.xlu1 %v3343_v3, %s3280_s8  ;;  %913 = vrot.lane.b32.xlu0 %v3329_v1, %s3280_s8 }
  0x26   :  { %919 = vrot.lane.b32.xlu1 %v3338_v2, %s3280_s8  ;;  %917 = vrot.lane.b32.xlu0 %v3324_v0, %s3280_s8 }
  0x2a   :  { %1099 = vrot.lane.b32.xlu1 %v3343_v3, %s3281_s9  ;;  %1097 = vrot.lane.b32.xlu0 %v3329_v1, %s3281_s9 }
  0x2e   :  { %1103 = vrot.lane.b32.xlu1 %v3338_v2, %s3281_s9  ;;  %1101 = vrot.lane.b32.xlu0 %v3324_v0, %s3281_s9 }
  0x32   :  { %1283 = vrot.lane.b32.xlu1 %v3343_v3, %s3282_s10  ;;  %1281 = vrot.lane.b32.xlu0 %v3329_v1, %s3282_s10 }
  0x36   :  { %1287 = vrot.lane.b32.xlu1 %v3338_v2, %s3282_s10  ;;  %1285 = vrot.lane.b32.xlu0 %v3324_v0, %s3282_s10 }
  0x3a   :  { %1467 = vrot.lane.b32.xlu1 %v3343_v3, %s3284_s11  ;;  %1465 = vrot.lane.b32.xlu0 %v3329_v1, %s3284_s11 }
  0x3e   :  { %1471 = vrot.lane.b32.xlu1 %v3338_v2, %s3284_s11  ;;  %1469 = vrot.lane.b32.xlu0 %v3324_v0, %s3284_s11 }
  0x42   :  { %1652 = vperm.xlu0 %3252, %v1649_v6  }
  0x74   :  { %v73_v15 = vpop.permute.xlu1 %72  ;;  %v69_v16 = vpop.permute.xlu0 %68 }
  0x78   :  { %v75_v22 = vpop.permute.xlu1 %74  ;;  %v71_v23 = vpop.permute.xlu0 %70 }
  0x79   :  { %v80_v25 = vsel %vm76_vm0, %v75_v22, %v69_v16  ;;  %v78_v26 = vsel %vm76_vm0, %v71_v23, %v73_v15  ;;  %v79_v27 = vsel %vm76_vm0, %v69_v16, %v71_v23  ;;  %v77_v28 = vsel %vm76_vm0, %v73_v15, %v75_v22  ;;  %v3194_v16 = vld [vmem:[%s3950_s2 + $0x10] sm:$0xff] }
  0x7a   :  { %v98_v29 = vmul.f32 %v3438_v18, %v79_v27  ;;  %v100_v30 = vmul.f32 %v3441_v19, %v77_v28  ;;  %v97_v31 = vmul.f32 %v3444_v20, %v80_v25  ;;  %v99_v32 = vmul.f32 %v3447_v21, %v78_v26 }
  0x7b   :  { %v3529_v15 = vrot.slane %v3417_v10, %v593_v59  ;;  %v3537_v25 = vrot.slane %v3428_v13, %v593_v59  ;;  %v3542_v27 = vrot.slane %v3433_v14, %v593_v59  ;;  %v3545_v28 = vrot.slane %v3423_v12, %v593_v59 }
  0x7c   :  { %v35_v34 = vpop.permute.xlu1 %34  ;;  %v33_v35 = vpop.permute.xlu0 %32  ;;  %137 = vmatprep.subr.mxu0 %v98_v29  ;;  %208 = vmatprep.subr.mxu1 %v100_v30 }
  0x7d   :  { %v45_v36 = vsel %vm42_vm1, %v33_v35, %v35_v34  ;;  %138 = vmatpush1.msra.mxu0 %v97_v31  ;;  %209 = vmatpush1.msra.mxu1 %v99_v32 }
  0x7e   :  { %v64_v38 = vmul.f32 %v3451_v24, %v45_v36  ;;  %3190 = vmatmul.mubr.msk.f32.vlgmr.msra.gmra.mxu0 %vm103_vm2, %v3189_v33  ;;  %3191 = vmatmul.mubr.msk.f32.vlgmr.msra.gmra.mxu1 %vm103_vm2, %v3189_v33 }
  0x7f   :  { %316 = vmatprep.mubr.f32.mxu0 %v3955_v4  ;;  %387 = vmatprep.mubr.f32.mxu1 %v3955_v4 }
  0x80   :  { %v39_v42 = vpop.permute.xlu1 %38  ;;  %v37_v43 = vpop.permute.xlu0 %36  ;;  %282 = vmatprep.subr.mxu0 %v64_v38  ;;  %v3197_v38 = vld [vmem:[%s3950_s2 + $0x18] sm:$0xff] }
  0x81   :  { %v46_v44 = vsel %vm42_vm1, %v39_v42, %v33_v35  ;;  %v43_v45 = vsel %vm42_vm1, %v37_v43, %v39_v42  ;;  %v44_v46 = vsel %vm42_vm1, %v35_v34, %v37_v43 }
  0x82   :  { %v63_v47 = vmul.f32 %v3471_v37, %v46_v44  ;;  %v65_v48 = vmul.f32 %v3475_v39, %v44_v46  ;;  %v66_v49 = vmul.f32 %v3478_v40, %v43_v45  ;;  %v3566_v44 = vrot.slane %v3423_v12, %v928_v41 }
  0x83   :  { %v3569_v45 = vrot.slane %v3417_v10, %v928_v41  ;;  %v3572_v46 = vrot.slane %v3433_v14, %v928_v41 }
  0x84   :  { %v397_v52 = vpop.permute.xlu1 %396  ;;  %v395_v53 = vpop.permute.xlu0 %394  ;;  %283 = vmatpush1.msra.mxu0 %v63_v47  ;;  %353 = vmatprep.subr.mxu1 %v66_v49  ;;  %v3200_v47 = vld [vmem:[%s3950_s2 + $0x20] sm:$0xff] }
  0x85   :  { %v405_v54 = vsel %vm402_vm3, %v395_v53, %v397_v52  ;;  %354 = vmatpush1.msra.mxu1 %v65_v48  ;;  %3192 = vmatmul.mubr.msk.f32.vlgmr.msra.gmra.mxu0 %vm103_vm2, %v67_v51  ;;  %v3580_v48 = vrot.slane %v3428_v13, %v928_v41 }
  0x86   :  { %v424_v56 = vmul.f32 %v3496_v50, %v405_v54  ;;  %3193 = vmatmul.mubr.msk.f32.vlgmr.msra.gmra.mxu1 %vm103_vm2, %v67_v51  ;;  %496 = vmatprep.mubr.f32.mxu0 %v3955_v4 }
  0x87   :  { %567 = vmatprep.mubr.f32.mxu1 %v3955_v4 }
  0x88   :  { %v401_v60 = vpop.permute.xlu1 %400  ;;  %v399_v61 = vpop.permute.xlu0 %398  ;;  %462 = vmatprep.subr.mxu0 %v424_v56 }
  0x89   :  { %v406_v62 = vsel %vm402_vm3, %v401_v60, %v395_v53  ;;  %v403_v63 = vsel %vm402_vm3, %v399_v61, %v401_v60  ;;  %v404_v5 = vsel %vm402_vm3, %v397_v52, %v399_v61  ;;  %v1112_v60 = vsub.s32 5, %v3410_v8  ;;  %v3203_v61 = vld [vmem:[%s3950_s2 + $0x28] sm:$0xff] }
  0x8a   :  { %v423_v6 = vmul.f32 %v3504_v55, %v406_v62  ;;  %v425_v7 = vmul.f32 %v3509_v57, %v404_v5  ;;  %v426_v11 = vmul.f32 %v3512_v58, %v403_v63 }
  0x8b   :  { %v3610_v63 = vrot.slane %v3423_v12, %v1112_v60  ;;  %v3613_v5 = vrot.slane %v3417_v10, %v1112_v60 }
  0x8c   :  { %v581_v17 = vpop.permute.xlu1 %580  ;;  %v579_v22 = vpop.permute.xlu0 %578  ;;  %463 = vmatpush1.msra.mxu0 %v423_v6  ;;  %533 = vmatprep.subr.mxu1 %v426_v11  ;;  %v3616_v6 = vrot.slane %v3433_v14, %v1112_v60 }
  0x8d   :  { %v589_v23 = vsel %vm586_vm4, %v579_v22, %v581_v17  ;;  %534 = vmatpush1.msra.mxu1 %v425_v7  ;;  %3195 = vmatmul.mubr.msk.f32.vlgmr.msra.gmra.mxu0 %vm103_vm2, %v3194_v16  ;;  %v3620_v7 = vrot.slane %v3428_v13, %v1112_v60  ;;  %v3209_v60 = vld [vmem:[%s3950_s2 + $0x38] sm:$0xff] }
  0x8e   :  { %v608_v26 = vmul.f32 %v3529_v15, %v589_v23  ;;  %3196 = vmatmul.mubr.msk.f32.vlgmr.msra.gmra.mxu1 %vm103_vm2, %v3194_v16  ;;  %680 = vmatprep.mubr.f32.mxu0 %v3955_v4 }
  0x8f   :  { %751 = vmatprep.mubr.f32.mxu1 %v3955_v4 }
  0x90   :  { %v585_v29 = vpop.permute.xlu1 %584  ;;  %v583_v30 = vpop.permute.xlu0 %582  ;;  %646 = vmatprep.subr.mxu0 %v608_v26 }
  0x91   :  { %v590_v31 = vsel %vm586_vm4, %v585_v29, %v579_v22  ;;  %v587_v32 = vsel %vm586_vm4, %v583_v30, %v585_v29  ;;  %v588_v33 = vsel %vm586_vm4, %v581_v17, %v583_v30 }
  0x92   :  { %v607_v34 = vmul.f32 %v3537_v25, %v590_v31  ;;  %v609_v35 = vmul.f32 %v3542_v27, %v588_v33  ;;  %v610_v36 = vmul.f32 %v3545_v28, %v587_v32  ;;  %v1296_v33 = vsub.s32 6, %v3410_v8 }
  0x94   :  { %v916_v42 = vpop.permute.xlu1 %915  ;;  %v914_v43 = vpop.permute.xlu0 %913  ;;  %647 = vmatpush1.msra.mxu0 %v607_v34  ;;  %717 = vmatprep.subr.mxu1 %v610_v36  ;;  %v3206_v34 = vld [vmem:[%s3950_s2 + $0x30] sm:$0xff]  ;;  %v3647_v41 = vrot.slane %v3417_v10, %v1296_v33 }
  0x95   :  { %718 = vmatpush1.msra.mxu1 %v609_v35  ;;  %3198 = vmatmul.mubr.msk.f32.vlgmr.msra.gmra.mxu0 %vm103_vm2, %v3197_v38  ;;  %v924_v49 = vsel %vm921_vm5, %v914_v43, %v916_v42 }
  0x96   :  { %797 = vmatprep.subr.mxu0 %v3343_v3  ;;  %3199 = vmatmul.mubr.msk.f32.vlgmr.msra.gmra.mxu1 %vm103_vm2, %v3197_v38  ;;  %v942_v59 = vmul.f32 %v3580_v48, %v924_v49  ;;  %v3644_v38 = vrot.slane %v3423_v12, %v1296_v33  ;;  %3966 = vst [vmem:[#allocation6_spill] sm:$0xff] %v3647_v41 }
  0x97   :  { %798 = vmatpush1.msra.mxu0 %v3329_v1  ;;  %831 = vmatprep.mubr.f32.mxu0 %v3955_v4 }
  0x98   :  { %v920_v51 = vpop.permute.xlu1 %919  ;;  %v918_v52 = vpop.permute.xlu0 %917  ;;  %868 = vmatprep.subr.mxu1 %v3338_v2  ;;  %902 = vmatprep.mubr.f32.mxu1 %v3955_v4  ;;  %3965 = vst [vmem:[#allocation5_spill] sm:$0xff] %v3644_v38 }
  0x99   :  { %v925_v3 = vsel %vm921_vm5, %v920_v51, %v914_v43  ;;  %v922_v53 = vsel %vm921_vm5, %v918_v52, %v920_v51  ;;  %v923_v1 = vsel %vm921_vm5, %v916_v42, %v918_v52  ;;  %3201 = vmatmul.mubr.msk.f32.vlgmr.msra.gmra.mxu0 %vm103_vm2, %v3200_v47  ;;  %869 = vmatpush1.msra.mxu1 %v3324_v0 }
  0x9a   :  { %v945_v54 = vmul.f32 %v3566_v44, %v925_v3  ;;  %v943_v56 = vmul.f32 %v3569_v45, %v923_v1  ;;  %v944_v2 = vmul.f32 %v3572_v46, %v922_v53  ;;  %3202 = vmatmul.mubr.msk.f32.vlgmr.msra.gmra.mxu1 %vm103_vm2, %v3200_v47  ;;  %1015 = vmatprep.mubr.f32.mxu0 %v3955_v4 }
  0x9b   :  { %1086 = vmatprep.mubr.f32.mxu1 %v3955_v4  ;;  %v3650_v42 = vrot.slane %v3433_v14, %v1296_v33  ;;  %v3653_v43 = vrot.slane %v3428_v13, %v1296_v33 }
  0x9c   :  { %v1100_v0 = vpop.permute.xlu1 %1099  ;;  %v1098_v62 = vpop.permute.xlu0 %1097  ;;  %981 = vmatprep.subr.mxu0 %v943_v56  ;;  %1052 = vmatprep.subr.mxu1 %v945_v54 }
  0x9d   :  { %982 = vmatpush1.msra.mxu0 %v942_v59  ;;  %1053 = vmatpush1.msra.mxu1 %v944_v2  ;;  %v1108_v11 = vsel %vm1105_vm6, %v1098_v62, %v1100_v0  ;;  %3967 = vst [vmem:[#allocation7_spill] sm:$0xff] %v3650_v42  ;;  %3968 = vst [vmem:[#allocation8_spill] sm:$0xff] %v3653_v43  ;;  %v1480_v59 = vsub.s32 7, %v3410_v8 }
  0x9e   :  { %3204 = vmatmul.mubr.msk.f32.vlgmr.msra.gmra.mxu0 %vm103_vm2, %v3203_v61  ;;  %3205 = vmatmul.mubr.msk.f32.vlgmr.msra.gmra.mxu1 %vm103_vm2, %v3203_v61  ;;  %v1126_v32 = vmul.f32 %v3620_v7, %v1108_v11 }
  0x9f   :  { %1199 = vmatprep.mubr.f32.mxu0 %v3955_v4  ;;  %1270 = vmatprep.mubr.f32.mxu1 %v3955_v4  ;;  %v3680_v8 = vrot.slane %v3417_v10, %v1480_v59  ;;  %v3683_v11 = vrot.slane %v3433_v14, %v1480_v59 }
  0xa0   :  { %v1104_v16 = vpop.permute.xlu1 %1103  ;;  %v1102_v17 = vpop.permute.xlu0 %1101 }
  0xa1   :  { %v1109_v22 = vsel %vm1105_vm6, %v1104_v16, %v1098_v62  ;;  %v1106_v23 = vsel %vm1105_vm6, %v1102_v17, %v1104_v16  ;;  %v1107_v26 = vsel %vm1105_vm6, %v1100_v0, %v1102_v17  ;;  %v3677_v62 = vrot.slane %v3423_v12, %v1480_v59  ;;  %3970 = vst [vmem:[#allocation10_spill] sm:$0xff] %v3680_v8 }
  0xa2   :  { %v1129_v29 = vmul.f32 %v3610_v63, %v1109_v22  ;;  %v1127_v30 = vmul.f32 %v3613_v5, %v1107_v26  ;;  %v1128_v31 = vmul.f32 %v3616_v6, %v1106_v23  ;;  %3971 = vst [vmem:[#allocation11_spill] sm:$0xff] %v3683_v11  ;;  %v3686_v16 = vrot.slane %v3428_v13, %v1480_v59 }
  0xa3   :  { %3969 = vst [vmem:[#allocation9_spill] sm:$0xff] %v3677_v62 }
  0xa4   :  { %v1284_v35 = vpop.permute.xlu1 %1283  ;;  %v1282_v36 = vpop.permute.xlu0 %1281  ;;  %1165 = vmatprep.subr.mxu0 %v1127_v30  ;;  %1236 = vmatprep.subr.mxu1 %v1129_v29  ;;  %3972 = vst [vmem:[#allocation12_spill] sm:$0xff] %v3686_v16 }
  0xa5   :  { %1166 = vmatpush1.msra.mxu0 %v1126_v32  ;;  %1237 = vmatpush1.msra.mxu1 %v1128_v31  ;;  %v1292_v47 = vsel %vm1289_vm7, %v1282_v36, %v1284_v35  ;;  %v3212_v31 = vld [vmem:[%s3950_s2 + $0x40] sm:$0xff] }
  0xa6   :  { %3207 = vmatmul.mubr.msk.f32.vlgmr.msra.gmra.mxu0 %vm103_vm2, %v3206_v34  ;;  %3208 = vmatmul.mubr.msk.f32.vlgmr.msra.gmra.mxu1 %vm103_vm2, %v3206_v34  ;;  %v1310_v2 = vmul.f32 %v3653_v43, %v1292_v47 }
  0xa7   :  { %1383 = vmatprep.mubr.f32.mxu0 %v3955_v4  ;;  %1454 = vmatprep.mubr.f32.mxu1 %v3955_v4 }
  0xa8   :  { %v1288_v49 = vpop.permute.xlu1 %1287  ;;  %v1286_v51 = vpop.permute.xlu0 %1285 }
  0xa9   :  { %v1293_v52 = vsel %vm1289_vm7, %v1288_v49, %v1282_v36  ;;  %v1290_v3 = vsel %vm1289_vm7, %v1286_v51, %v1288_v49  ;;  %v1291_v53 = vsel %vm1289_vm7, %v1284_v35, %v1286_v51 }
  0xaa   :  { %v1313_v1 = vmul.f32 %v3644_v38, %v1293_v52  ;;  %v1311_v54 = vmul.f32 %v3647_v41, %v1291_v53  ;;  %v1312_v56 = vmul.f32 %v3650_v42, %v1290_v3 }
  0xac   :  { %v1468_v61 = vpop.permute.xlu1 %1467  ;;  %v1466_v0 = vpop.permute.xlu0 %1465  ;;  %1349 = vmatprep.subr.mxu0 %v1311_v54  ;;  %1420 = vmatprep.subr.mxu1 %v1313_v1 }
  0xad   :  { %1350 = vmatpush1.msra.mxu0 %v1310_v2  ;;  %1421 = vmatpush1.msra.mxu1 %v1312_v56  ;;  %v1476_v17 = vsel %vm1473_vm8, %v1466_v0, %v1468_v61 }
  0xae   :  { %3210 = vmatmul.mubr.msk.f32.vlgmr.msra.gmra.mxu0 %vm103_vm2, %v3209_v60  ;;  %3211 = vmatmul.mubr.msk.f32.vlgmr.msra.gmra.mxu1 %vm103_vm2, %v3209_v60  ;;  %v1494_v30 = vmul.f32 %v3686_v16, %v1476_v17 }
  0xaf   :  { %1567 = vmatprep.mubr.f32.mxu0 %v3955_v4  ;;  %1638 = vmatprep.mubr.f32.mxu1 %v3955_v4 }
  0xb0   :  { %v1472_v22 = vpop.permute.xlu1 %1471  ;;  %v1470_v23 = vpop.permute.xlu0 %1469 }
  0xb1   :  { %v1477_v12 = vsel %vm1473_vm8, %v1472_v22, %v1466_v0  ;;  %v1474_v10 = vsel %vm1473_vm8, %v1470_v23, %v1472_v22  ;;  %v1475_v14 = vsel %vm1473_vm8, %v1468_v61, %v1470_v23 }
  0xb2   :  { %v1497_v13 = vmul.f32 %v3677_v62, %v1477_v12  ;;  %v1495_v26 = vmul.f32 %v3680_v8, %v1475_v14  ;;  %v1496_v29 = vmul.f32 %v3683_v11, %v1474_v10 }
  0xb4   :  { %1533 = vmatprep.subr.mxu0 %v1495_v26  ;;  %1604 = vmatprep.subr.mxu1 %v1497_v13 }
  0xb5   :  { %1534 = vmatpush1.msra.mxu0 %v1494_v30  ;;  %1605 = vmatpush1.msra.mxu1 %v1496_v29 }
  0xb6   :  { %3213 = vmatmul.mubr.msk.f32.vlgmr.msra.gmra.mxu0 %vm103_vm2, %v3212_v31  ;;  %3214 = vmatmul.mubr.msk.f32.vlgmr.msra.gmra.mxu1 %vm103_vm2, %v3212_v31 }
  0xb7   :  { %1773 = vmatprep.mubr.f32.mxu0 %v3955_v4  ;;  %1844 = vmatprep.mubr.f32.mxu1 %v3955_v4 }
 0x13e   :  { %v173_v32 = vpop.f32.mrf.mxu0  ;;  %v244_v33 = vpop.f32.mrf.mxu1 }
 0x140   :  { %v175_v34 = vpop.f32.mrf.mxu0  ;;  %v246_v35 = vpop.f32.mrf.mxu1 }
 0x145   :  { %v318_v36 = vpop.f32.mrf.mxu0 }
 0x146   :  { %v389_v47 = vpop.f32.mrf.mxu1  ;;  %v319_v23 = vadd.f32 %v318_v36, %v173_v32 }
 0x147   :  { %v320_v49 = vpop.f32.mrf.mxu0  ;;  %v390_v17 = vadd.f32 %v389_v47, %v244_v33 }
 0x148   :  { %v391_v51 = vpop.f32.mrf.mxu1  ;;  %v321_v26 = vadd.f32 %v320_v49, %v175_v34 }
 0x149   :  { %v392_v10 = vadd.f32 %v391_v51, %v246_v35 }
 0x14d   :  { %v498_v52 = vpop.f32.mrf.mxu0 }
 0x14e   :  { %v569_v3 = vpop.f32.mrf.mxu1  ;;  %v574_v29 = vadd.f32 %v498_v52, %v319_v23 }
 0x14f   :  { %v500_v53 = vpop.f32.mrf.mxu0  ;;  %v576_v14 = vadd.f32 %v569_v3, %v390_v17 }
 0x150   :  { %v571_v1 = vpop.f32.mrf.mxu1  ;;  %v575_v11 = vadd.f32 %v500_v53, %v321_v26 }
 0x151   :  { %v577_v31 = vadd.f32 %v571_v1, %v392_v10 }
 0x155   :  { %v682_v54 = vpop.f32.mrf.mxu0 }
 0x156   :  { %v753_v56 = vpop.f32.mrf.mxu1  ;;  %v758_v8 = vadd.f32 %v682_v54, %v574_v29 }
 0x157   :  { %v684_v2 = vpop.f32.mrf.mxu0  ;;  %v760_v4 = vadd.f32 %v753_v56, %v576_v14 }
 0x158   :  { %v755_v59 = vpop.f32.mrf.mxu1  ;;  %v759_v43 = vadd.f32 %v684_v2, %v575_v11  ;;  %v1653_v11 = vpop.permute.xlu0 %1652 }
 0x159   :  { %v833_v61 = vpop.f32.mrf.mxu0  ;;  %v761_v42 = vadd.f32 %v755_v59, %v577_v31 }
 0x15a   :  { %v904_v60 = vpop.f32.mrf.mxu1  ;;  %v909_v33 = vadd.f32 %v833_v61, %v758_v8 }
 0x15b   :  { %v835_v22 = vpop.f32.mrf.mxu0  ;;  %v911_v41 = vadd.f32 %v904_v60, %v760_v4 }
 0x15c   :  { %v906_v0 = vpop.f32.mrf.mxu1  ;;  %v910_v34 = vadd.f32 %v835_v22, %v759_v43 }
 0x15d   :  { %v912_v36 = vadd.f32 %v906_v0, %v761_v42 }
 0x15e   :  { %v1088_v12 = vpop.f32.mrf.mxu1  ;;  %v1017_v13 = vpop.f32.mrf.mxu0 }
 0x15f   :  { %v1095_v35 = vadd.f32 %v1088_v12, %v911_v41  ;;  %v1093_v49 = vadd.f32 %v1017_v13, %v909_v33 }
 0x160   :  { %v1090_v30 = vpop.f32.mrf.mxu1  ;;  %v1019_v62 = vpop.f32.mrf.mxu0 }
 0x161   :  { %v1094_v52 = vadd.f32 %v1019_v62, %v910_v34  ;;  %v1096_v1 = vadd.f32 %v1090_v30, %v912_v36  ;;  %v3149_v36 = vld [vmem:[%s3953_s5] sm:$0xff] }
 0x166   :  { %v1201_v16 = vpop.f32.mrf.mxu0  ;;  %v1272_v38 = vpop.f32.mrf.mxu1 }
 0x167   :  { %v1277_v56 = vadd.f32 %v1201_v16, %v1093_v49  ;;  %v1279_v17 = vadd.f32 %v1272_v38, %v1095_v35 }
 0x168   :  { %v1203_v47 = vpop.f32.mrf.mxu0  ;;  %v1274_v32 = vpop.f32.mrf.mxu1 }
 0x169   :  { %v1278_v23 = vadd.f32 %v1203_v47, %v1094_v52  ;;  %v1280_v10 = vadd.f32 %v1274_v32, %v1096_v1 }
 0x16e   :  { %v1385_v51 = vpop.f32.mrf.mxu0  ;;  %v1456_v3 = vpop.f32.mrf.mxu1 }
 0x16f   :  { %v1461_v59 = vadd.f32 %v1385_v51, %v1277_v56  ;;  %v1463_v4 = vadd.f32 %v1456_v3, %v1279_v17 }
 0x170   :  { %v1387_v53 = vpop.f32.mrf.mxu0  ;;  %v1458_v54 = vpop.f32.mrf.mxu1 }
 0x171   :  { %v1462_v60 = vadd.f32 %v1387_v53, %v1278_v23  ;;  %v1464_v42 = vadd.f32 %v1458_v54, %v1280_v10 }
 0x176   :  { %v1569_v8 = vpop.f32.mrf.mxu0  ;;  %v1640_v2 = vpop.f32.mrf.mxu1 }
 0x177   :  { %v1645_v41 = vadd.f32 %v1569_v8, %v1461_v59  ;;  %v1647_v61 = vadd.f32 %v1640_v2, %v1463_v4 }
 0x178   :  { %v1571_v0 = vpop.f32.mrf.mxu0  ;;  %v1642_v43 = vpop.f32.mrf.mxu1 }
 0x179   :  { %v1655_v22 = vadd.f32 %v1653_v11, %v1645_v41  ;;  %v1657_v62 = vadd.f32 %v1653_v11, %v1647_v61  ;;  %v1646_v12 = vadd.f32 %v1571_v0, %v1462_v60  ;;  %v1648_v16 = vadd.f32 %v1642_v43, %v1464_v42  ;;  %v1687_v0 = vld [vmem:[%s3952_s4] sm:$0xff] }
 0x17b   :  { %vm1659_vm9 = vcmp.ge.f32.partialorder %v1655_v22, 0.0  ;;  %vm1661_vm10 = vcmp.ge.f32.partialorder %v1657_v62, 0.0  ;;  %v1663_v38 = vmul.f32 0.01, %v1655_v22  ;;  %v1665_v14 = vmul.f32 0.01, %v1657_v62 }
 0x17c   :  { %v1656_v13 = vadd.f32 %v1653_v11, %v1646_v12  ;;  %v1658_v30 = vadd.f32 %v1653_v11, %v1648_v16 }
 0x17d   :  { %v3709_v26 = vsel %vm1659_vm9, %v1655_v22, %v1663_v38  ;;  %v3711_v29 = vsel %vm1661_vm10, %v1657_v62, %v1665_v14 }
 0x17e   :  { %vm1660_vm11 = vcmp.ge.f32.partialorder %v1656_v13, 0.0  ;;  %v1664_v31 = vmul.f32 0.01, %v1656_v13  ;;  %1692 = vrot.lane.b32.xlu0 %v3711_v29, %s3275_s25  ;;  %1688 = vrot.lane.b32.xlu1 %v3709_v26, %s3275_s25  ;;  %v1666_v47 = vmul.f32 0.01, %v1658_v30  ;;  %vm1662_vm12 = vcmp.ge.f32.partialorder %v1658_v30, 0.0 }
 0x180   :  { %v3717_v33 = vsel %vm1660_vm11, %v1656_v13, %v1664_v31  ;;  %v3723_v32 = vsel %vm1662_vm12, %v1658_v30, %v1666_v47  ;;  %v3220_v30 = vld [vmem:[%s3952_s4 + $0x10] sm:$0xff] }
 0x182   :  { %1671 = vrot.lane.b32.xlu0 %v3709_v26, %s3277_s30  ;;  %1690 = vrot.lane.b32.xlu1 %v3717_v33, %s3275_s25 }
 0x186   :  { %1675 = vrot.lane.b32.xlu0 %v3711_v29, %s3277_s30  ;;  %1694 = vrot.lane.b32.xlu1 %v3723_v32, %s3275_s25 }
 0x18a   :  { %1996 = vrot.lane.b32.xlu0 %v3709_v26, %s3278_s0  ;;  %1673 = vrot.lane.b32.xlu1 %v3717_v33, %s3277_s30 }
 0x18e   :  { %2000 = vrot.lane.b32.xlu0 %v3711_v29, %s3278_s0  ;;  %1677 = vrot.lane.b32.xlu1 %v3723_v32, %s3277_s30 }
 0x192   :  { %2163 = vrot.lane.b32.xlu0 %v3709_v26, %s3279_s7  ;;  %1998 = vrot.lane.b32.xlu1 %v3717_v33, %s3278_s0 }
 0x196   :  { %2167 = vrot.lane.b32.xlu0 %v3711_v29, %s3279_s7  ;;  %2002 = vrot.lane.b32.xlu1 %v3723_v32, %s3278_s0 }
 0x19a   :  { %2481 = vrot.lane.b32.xlu0 %v3709_v26, %s3280_s8  ;;  %2165 = vrot.lane.b32.xlu1 %v3717_v33, %s3279_s7 }
 0x19e   :  { %2485 = vrot.lane.b32.xlu0 %v3711_v29, %s3280_s8  ;;  %2169 = vrot.lane.b32.xlu1 %v3723_v32, %s3279_s7 }
 0x1a2   :  { %2648 = vrot.lane.b32.xlu0 %v3709_v26, %s3281_s9  ;;  %2483 = vrot.lane.b32.xlu1 %v3717_v33, %s3280_s8 }
 0x1a6   :  { %2652 = vrot.lane.b32.xlu0 %v3711_v29, %s3281_s9  ;;  %2487 = vrot.lane.b32.xlu1 %v3723_v32, %s3280_s8 }
 0x1aa   :  { %2815 = vrot.lane.b32.xlu0 %v3709_v26, %s3282_s10  ;;  %2650 = vrot.lane.b32.xlu1 %v3717_v33, %s3281_s9 }
 0x1ae   :  { %2819 = vrot.lane.b32.xlu0 %v3711_v29, %s3282_s10  ;;  %2654 = vrot.lane.b32.xlu1 %v3723_v32, %s3281_s9 }
 0x1b2   :  { %2982 = vrot.lane.b32.xlu0 %v3709_v26, %s3284_s11  ;;  %2817 = vrot.lane.b32.xlu1 %v3717_v33, %s3282_s10 }
 0x1b6   :  { %2986 = vrot.lane.b32.xlu0 %v3711_v29, %s3284_s11  ;;  %2821 = vrot.lane.b32.xlu1 %v3723_v32, %s3282_s10 }
 0x1ba   :  { %3152 = vperm.xlu0 %3252, %v3149_v36   ;;  %2984 = vrot.lane.b32.xlu1 %v3717_v33, %s3284_s11 }
 0x1be   :  { %2988 = vrot.lane.b32.xlu1 %v3723_v32, %s3284_s11 }
 0x1f0   :  { %v1693_v35 = vpop.permute.xlu0 %1692  ;;  %v1689_v51 = vpop.permute.xlu1 %1688 }
 0x1f4   :  { %v1672_v3 = vpop.permute.xlu0 %1671  ;;  %v1691_v34 = vpop.permute.xlu1 %1690 }
 0x1f5   :  { %v1698_v49 = vsel %vm76_vm0, %v1689_v51, %v1691_v34  ;;  %v1697_v1 = vsel %vm76_vm0, %v1691_v34, %v1693_v35 }
 0x1f6   :  { %v1701_v52 = vmul.f32 %v1698_v49, %v3438_v18  ;;  %v3215_v18 = vld [vmem:[%s3952_s4 + $0x8] sm:$0xff]  ;;  %v1702_v59 = vmul.f32 %v1697_v1, %v3447_v21 }
 0x1f8   :  { %v1676_v56 = vpop.permute.xlu0 %1675  ;;  %1739 = vmatprep.subr.mxu0 %v1701_v52  ;;  %v1695_v17 = vpop.permute.xlu1 %1694  ;;  %v3223_v52 = vld [vmem:[%s3952_s4 + $0x18] sm:$0xff] }
 0x1f9   :  { %v1696_v53 = vsel %vm76_vm0, %v1693_v35, %v1695_v17  ;;  %v1699_v54 = vsel %vm76_vm0, %v1695_v17, %v1689_v51 }
 0x1fa   :  { %v1700_v23 = vmul.f32 %v1699_v54, %v3444_v20  ;;  %v1703_v10 = vmul.f32 %v1696_v53, %v3441_v19  ;;  %v3973_v19 = vmov 0.0  }
 0x1fc   :  { %v1997_v4 = vpop.permute.xlu0 %1996  ;;  %1740 = vmatpush1.msra.mxu0 %v1700_v23  ;;  %1810 = vmatprep.subr.mxu1 %v1703_v10  ;;  %v1674_v11 = vpop.permute.xlu1 %1673 }
 0x1fd   :  { %v1681_v8 = vsel %vm42_vm1, %v1672_v3, %v1674_v11  ;;  %1811 = vmatpush1.msra.mxu1 %v1702_v59  ;;  %3216 = vmatmul.mubr.msk.f32.vlgmr.msra.gmra.mxu0 %vm103_vm2, %v3215_v18  ;;  %v1680_v21 = vsel %vm42_vm1, %v1674_v11, %v1676_v56  ;;  %v3232_v11 = vld [vmem:[%s3952_s4 + $0x30] sm:$0xff] }
 0x1fe   :  { %v1684_v20 = vmul.f32 %v1681_v8, %v3451_v24  ;;  %3217 = vmatmul.mubr.msk.f32.vlgmr.msra.gmra.mxu1 %vm103_vm2, %v3215_v18  ;;  %1918 = vmatprep.mubr.f32.mxu0 %v3973_v19  ;;  %v1685_v43 = vmul.f32 %v1680_v21, %v3475_v39 }
 0x1ff   :  { %1989 = vmatprep.mubr.f32.mxu1 %v3973_v19 }
 0x200   :  { %v2001_v2 = vpop.permute.xlu0 %2000  ;;  %1884 = vmatprep.subr.mxu0 %v1684_v20  ;;  %v1678_v60 = vpop.permute.xlu1 %1677 }
 0x201   :  { %v1679_v42 = vsel %vm42_vm1, %v1676_v56, %v1678_v60  ;;  %v1682_v41 = vsel %vm42_vm1, %v1678_v60, %v1672_v3 }
 0x202   :  { %v1683_v24 = vmul.f32 %v1682_v41, %v3471_v37  ;;  %v1686_v61 = vmul.f32 %v1679_v42, %v3478_v40 }
 0x204   :  { %v2164_v22 = vpop.permute.xlu0 %2163  ;;  %1885 = vmatpush1.msra.mxu0 %v1683_v24  ;;  %1955 = vmatprep.subr.mxu1 %v1686_v61  ;;  %v1999_v62 = vpop.permute.xlu1 %1998  ;;  %v3974_v61 = vld [vmem:[#allocation8_spill] sm:$0xff] }
 0x205   :  { %v2006_v12 = vsel %vm402_vm3, %v1997_v4, %v1999_v62  ;;  %1956 = vmatpush1.msra.mxu1 %v1685_v43  ;;  %3218 = vmatmul.mubr.msk.f32.vlgmr.msra.gmra.mxu0 %vm103_vm2, %v1687_v0  ;;  %v2005_v39 = vsel %vm402_vm3, %v1999_v62, %v2001_v2  ;;  %v3975_v43 = vld [vmem:[#allocation6_spill] sm:$0xff] }
 0x206   :  { %v2009_v37 = vmul.f32 %v2006_v12, %v3496_v50  ;;  %3219 = vmatmul.mubr.msk.f32.vlgmr.msra.gmra.mxu1 %vm103_vm2, %v1687_v0  ;;  %2081 = vmatprep.mubr.f32.mxu0 %v3973_v19  ;;  %v2010_v31 = vmul.f32 %v2005_v39, %v3509_v57 }
 0x207   :  { %2152 = vmatprep.mubr.f32.mxu1 %v3973_v19 }
 0x208   :  { %v2168_v40 = vpop.permute.xlu0 %2167  ;;  %2047 = vmatprep.subr.mxu0 %v2009_v37  ;;  %v2003_v16 = vpop.permute.xlu1 %2002  ;;  %v3976_v37 = vld [vmem:[#allocation7_spill] sm:$0xff] }
 0x209   :  { %v2004_v38 = vsel %vm402_vm3, %v2001_v2, %v2003_v16  ;;  %v2007_v14 = vsel %vm402_vm3, %v2003_v16, %v1997_v4 }
 0x20a   :  { %v2008_v50 = vmul.f32 %v2007_v14, %v3504_v55  ;;  %v2011_v13 = vmul.f32 %v2004_v38, %v3512_v58 }
 0x20c   :  { %v2482_v47 = vpop.permute.xlu0 %2481  ;;  %2048 = vmatpush1.msra.mxu0 %v2008_v50  ;;  %2118 = vmatprep.subr.mxu1 %v2011_v13  ;;  %v2166_v36 = vpop.permute.xlu1 %2165 }
 0x20d   :  { %v2173_v35 = vsel %vm586_vm4, %v2164_v22, %v2166_v36  ;;  %2119 = vmatpush1.msra.mxu1 %v2010_v31  ;;  %3221 = vmatmul.mubr.msk.f32.vlgmr.msra.gmra.mxu0 %vm103_vm2, %v3220_v30  ;;  %v2172_v57 = vsel %vm586_vm4, %v2166_v36, %v2168_v40 }
 0x20e   :  { %v2176_v55 = vmul.f32 %v2173_v35, %v3529_v15  ;;  %3222 = vmatmul.mubr.msk.f32.vlgmr.msra.gmra.mxu1 %vm103_vm2, %v3220_v30  ;;  %2248 = vmatprep.mubr.f32.mxu0 %v3973_v19  ;;  %v2177_v1 = vmul.f32 %v2172_v57, %v3542_v27  ;;  %v3226_v27 = vld [vmem:[%s3952_s4 + $0x20] sm:$0xff]  ;;  %v3978_v30 = vld [vmem:[#allocation12_spill] sm:$0xff] }
 0x20f   :  { %2319 = vmatprep.mubr.f32.mxu1 %v3973_v19  ;;  %v3238_v35 = vld [vmem:[%s3952_s4 + $0x40] sm:$0xff] }
 0x210   :  { %v2486_v58 = vpop.permute.xlu0 %2485  ;;  %2214 = vmatprep.subr.mxu0 %v2176_v55  ;;  %v2170_v51 = vpop.permute.xlu1 %2169 }
 0x211   :  { %v2171_v3 = vsel %vm586_vm4, %v2168_v40, %v2170_v51  ;;  %v2174_v34 = vsel %vm586_vm4, %v2170_v51, %v2164_v22  ;;  %v3977_v40 = vld [vmem:[#allocation5_spill] sm:$0xff]  ;;  %v3980_v51 = vld [vmem:[#allocation11_spill] sm:$0xff] }
 0x212   :  { %v2175_v15 = vmul.f32 %v2174_v34, %v3537_v25  ;;  %v2178_v49 = vmul.f32 %v2171_v3, %v3545_v28  ;;  %v3981_v34 = vld [vmem:[#allocation9_spill] sm:$0xff] }
 0x214   :  { %v2649_v56 = vpop.permute.xlu0 %2648  ;;  %2215 = vmatpush1.msra.mxu0 %v2175_v15  ;;  %2285 = vmatprep.subr.mxu1 %v2178_v49  ;;  %v2484_v17 = vpop.permute.xlu1 %2483 }
 0x215   :  { %v2490_v53 = vsel %vm921_vm5, %v2484_v17, %v2486_v58  ;;  %v2491_v54 = vsel %vm921_vm5, %v2482_v47, %v2484_v17  ;;  %3224 = vmatmul.mubr.msk.f32.vlgmr.msra.gmra.mxu0 %vm103_vm2, %v3223_v52  ;;  %2286 = vmatpush1.msra.mxu1 %v2177_v1 }
 0x216   :  { %v2493_v25 = vmul.f32 %v2491_v54, %v3580_v48  ;;  %v2494_v28 = vmul.f32 %v2490_v53, %v3569_v45  ;;  %2365 = vmatprep.subr.mxu0 %v3717_v33  ;;  %2436 = vmatprep.subr.mxu1 %v3723_v32 }
 0x217   :  { %2366 = vmatpush1.msra.mxu0 %v3709_v26  ;;  %3225 = vmatmul.mubr.msk.f32.vlgmr.msra.gmra.mxu1 %vm103_vm2, %v3223_v52 }
 0x218   :  { %2437 = vmatpush1.msra.mxu1 %v3711_v29  ;;  %v2653_v23 = vpop.permute.xlu0 %2652  ;;  %2399 = vmatprep.mubr.f32.mxu0 %v3973_v19  ;;  %v2488_v48 = vpop.permute.xlu1 %2487  ;;  %v3229_v29 = vld [vmem:[%s3952_s4 + $0x28] sm:$0xff] }
 0x219   :  { %2532 = vmatprep.subr.mxu0 %v2494_v28  ;;  %v2489_v45 = vsel %vm921_vm5, %v2486_v58, %v2488_v48  ;;  %v2492_v33 = vsel %vm921_vm5, %v2488_v48, %v2482_v47  ;;  %3227 = vmatmul.mubr.msk.f32.vlgmr.msra.gmra.mxu0 %vm103_vm2, %v3226_v27  ;;  %v3979_v47 = vld [vmem:[#allocation10_spill] sm:$0xff] }
 0x21a   :  { %v2495_v32 = vmul.f32 %v2489_v45, %v3572_v46  ;;  %v2496_v26 = vmul.f32 %v2492_v33, %v3566_v44  ;;  %2533 = vmatpush1.msra.mxu0 %v2493_v25  ;;  %2470 = vmatprep.mubr.f32.mxu1 %v3973_v19 }
 0x21b   :  { %3228 = vmatmul.mubr.msk.f32.vlgmr.msra.gmra.mxu1 %vm103_vm2, %v3226_v27  ;;  %2566 = vmatprep.mubr.f32.mxu0 %v3973_v19 }
 0x21c   :  { %v2816_v10 = vpop.permute.xlu0 %2815  ;;  %2603 = vmatprep.subr.mxu1 %v2496_v26  ;;  %v2651_v18 = vpop.permute.xlu1 %2650  ;;  %2637 = vmatprep.mubr.f32.mxu1 %v3973_v19 }
 0x21d   :  { %v2657_v46 = vsel %vm1105_vm6, %v2651_v18, %v2653_v23  ;;  %v2658_v44 = vsel %vm1105_vm6, %v2649_v56, %v2651_v18  ;;  %2604 = vmatpush1.msra.mxu1 %v2495_v32  ;;  %3230 = vmatmul.mubr.msk.f32.vlgmr.msra.gmra.mxu0 %vm103_vm2, %v3229_v29 }
 0x21e   :  { %v2660_v59 = vmul.f32 %v2658_v44, %v3620_v7  ;;  %v2661_v4 = vmul.f32 %v2657_v46, %v3613_v5  ;;  %2733 = vmatprep.mubr.f32.mxu0 %v3973_v19 }
 0x21f   :  { %3231 = vmatmul.mubr.msk.f32.vlgmr.msra.gmra.mxu1 %vm103_vm2, %v3229_v29 }
 0x220   :  { %v2820_v8 = vpop.permute.xlu0 %2819  ;;  %2699 = vmatprep.subr.mxu0 %v2661_v4  ;;  %v2655_v20 = vpop.permute.xlu1 %2654  ;;  %2804 = vmatprep.mubr.f32.mxu1 %v3973_v19 }
 0x221   :  { %v2656_v21 = vsel %vm1105_vm6, %v2653_v23, %v2655_v20  ;;  %v2659_v7 = vsel %vm1105_vm6, %v2655_v20, %v2649_v56  ;;  %2700 = vmatpush1.msra.mxu0 %v2660_v59 }
 0x222   :  { %v2662_v5 = vmul.f32 %v2656_v21, %v3616_v6  ;;  %v2663_v2 = vmul.f32 %v2659_v7, %v3610_v63  ;;  %3233 = vmatmul.mubr.msk.f32.vlgmr.msra.gmra.mxu0 %vm103_vm2, %v3232_v11  ;;  %v3235_v63 = vld [vmem:[%s3952_s4 + $0x38] sm:$0xff]  ;;  %s3285_s4 = smov [#allocation2]  }
 0x223   :  { %2900 = vmatprep.mubr.f32.mxu0 %v3973_v19  ;;  %s3181_s12 = sshll.u32 %s3285_s4, 4  ;;  %s3182_s12 = int_to_ptr.vmem [resolvable:$true] %s3181_s12 }
 0x224   :  { %2770 = vmatprep.subr.mxu1 %v2663_v2  ;;  %v2818_v60 = vpop.permute.xlu1 %2817  ;;  %v2983_v24 = vpop.permute.xlu0 %2982  ;;  %s3253_s13 = scalar_lea.vmem %s3182_s12, 512  ;;  %p3258_p1 = scmp.lt.s32.totalorder %s3182_s12, %s3182_s12 }
 0x225   :  { %v2824_v42 = vsel %vm1289_vm7, %v2818_v60, %v2820_v8  ;;  %v2825_v41 = vsel %vm1289_vm7, %v2816_v10, %v2818_v60  ;;  %2771 = vmatpush1.msra.mxu1 %v2662_v5  ;;  %p3254_p0 = scmp.ne.s32.totalorder %s3182_s12, %s3253_s13  ;;  %p3259_p2 = scmp.lt.s32.totalorder %s3253_s13, %s3253_s13 }
 0x226   :  { %v2827_v0 = vmul.f32 %v2825_v41, %v3974_v61  ;;  %v2828_v6 = vmul.f32 %v2824_v42, %v3975_v43  ;;  %3234 = vmatmul.mubr.msk.f32.vlgmr.msra.gmra.mxu1 %vm103_vm2, %v3232_v11 }
 0x227   :  { %2971 = vmatprep.mubr.f32.mxu1 %v3973_v19  ;;  %p3260_p3 = por %p3259_p2, %p3258_p1 }
 0x228   :  { %2866 = vmatprep.subr.mxu0 %v2828_v6  ;;  %v2822_v22 = vpop.permute.xlu1 %2821  ;;  %v2987_v38 = vpop.permute.xlu0 %2986 }
 0x229   :  { %v2823_v62 = vsel %vm1289_vm7, %v2820_v8, %v2822_v22  ;;  %v2826_v12 = vsel %vm1289_vm7, %v2822_v22, %v2816_v10  ;;  %2867 = vmatpush1.msra.mxu0 %v2827_v0  ;;  %p3261_p4 = pnand %p3260_p3, %p3254_p0 }
 0x22a   :  { %v2829_v39 = vmul.f32 %v2823_v62, %v3976_v37  ;;  %v2830_v16 = vmul.f32 %v2826_v12, %v3977_v40  ;;  %3236 = vmatmul.mubr.msk.f32.vlgmr.msra.gmra.mxu0 %vm103_vm2, %v3235_v63 }
 0x22b   :  { %3067 = vmatprep.mubr.f32.mxu0 %v3973_v19 }
 0x22c   :  { %2937 = vmatprep.subr.mxu1 %v2830_v16  ;;  %v2985_v14 = vpop.permute.xlu1 %2984 }
 0x22d   :  { %v2991_v50 = vsel %vm1473_vm8, %v2985_v14, %v2987_v38  ;;  %v2992_v13 = vsel %vm1473_vm8, %v2983_v24, %v2985_v14  ;;  %2938 = vmatpush1.msra.mxu1 %v2829_v39 }
 0x22e   :  { %v2994_v31 = vmul.f32 %v2992_v13, %v3978_v30  ;;  %v2995_v36 = vmul.f32 %v2991_v50, %v3979_v47  ;;  %3237 = vmatmul.mubr.msk.f32.vlgmr.msra.gmra.mxu1 %vm103_vm2, %v3235_v63 }
 0x22f   :  { %3138 = vmatprep.mubr.f32.mxu1 %v3973_v19 }
 0x230   :  { %3033 = vmatprep.subr.mxu0 %v2995_v36  ;;  %v2989_v55 = vpop.permute.xlu1 %2988 }
 0x231   :  { %v2990_v57 = vsel %vm1473_vm8, %v2987_v38, %v2989_v55  ;;  %v2993_v58 = vsel %vm1473_vm8, %v2989_v55, %v2983_v24  ;;  %3034 = vmatpush1.msra.mxu0 %v2994_v31 }
 0x232   :  { %v2996_v3 = vmul.f32 %v2990_v57, %v3980_v51  ;;  %v2997_v15 = vmul.f32 %v2993_v58, %v3981_v34  ;;  %3239 = vmatmul.mubr.msk.f32.vlgmr.msra.gmra.mxu0 %vm103_vm2, %v3238_v35 }
 0x234   :  { %3104 = vmatprep.subr.mxu1 %v2997_v15 }
 0x235   :  { %3105 = vmatpush1.msra.mxu1 %v2996_v3  ;;  %v3153_v47 = vpop.permute.xlu0 %3152 }
 0x236   :  { %3240 = vmatmul.mubr.msk.f32.vlgmr.msra.gmra.mxu1 %vm103_vm2, %v3238_v35 }
 0x2bd   :  { %v1775_v19 = vpop.f32.mrf.mxu0 }
 0x2be   :  { %v1846_v49 = vpop.f32.mrf.mxu1 }
 0x2bf   :  { %v1777_v52 = vpop.f32.mrf.mxu0 }
 0x2c0   :  { %v1848_v1 = vpop.f32.mrf.mxu1 }
 0x2c5   :  { %v1920_v56 = vpop.f32.mrf.mxu0 }
 0x2c6   :  { %v1991_v17 = vpop.f32.mrf.mxu1  ;;  %v1921_v10 = vadd.f32 %v1920_v56, %v1775_v19 }
 0x2c7   :  { %v1922_v53 = vpop.f32.mrf.mxu0  ;;  %v1992_v59 = vadd.f32 %v1991_v17, %v1846_v49 }
 0x2c8   :  { %v1993_v9 = vpop.f32.mrf.mxu1  ;;  %v1923_v46 = vadd.f32 %v1922_v53, %v1777_v52 }
 0x2c9   :  { %v1994_v5 = vadd.f32 %v1993_v9, %v1848_v1 }
 0x2cd   :  { %v2083_v54 = vpop.f32.mrf.mxu0 }
 0x2ce   :  { %v2154_v25 = vpop.f32.mrf.mxu1  ;;  %v2159_v4 = vadd.f32 %v2083_v54, %v1921_v10 }
 0x2cf   :  { %v2085_v28 = vpop.f32.mrf.mxu0  ;;  %v2161_v21 = vadd.f32 %v2154_v25, %v1992_v59 }
 0x2d0   :  { %v2156_v27 = vpop.f32.mrf.mxu1  ;;  %v2160_v8 = vadd.f32 %v2085_v28, %v1923_v46 }
 0x2d1   :  { %v2162_v61 = vadd.f32 %v2156_v27, %v1994_v5 }
 0x2d5   :  { %v2250_v23 = vpop.f32.mrf.mxu0 }
 0x2d6   :  { %v2326_v7 = vadd.f32 %v2250_v23, %v2159_v4 }
 0x2d7   :  { %v2321_v48 = vpop.f32.mrf.mxu1  ;;  %v2252_v45 = vpop.f32.mrf.mxu0 }
 0x2d8   :  { %v2327_v60 = vadd.f32 %v2252_v45, %v2160_v8  ;;  %v2328_v41 = vadd.f32 %v2321_v48, %v2161_v21 }
 0x2d9   :  { %v2323_v33 = vpop.f32.mrf.mxu1  ;;  %v2401_v32 = vpop.f32.mrf.mxu0 }
 0x2da   :  { %v2477_v24 = vadd.f32 %v2401_v32, %v2326_v7  ;;  %v2329_v12 = vadd.f32 %v2323_v33, %v2162_v61 }
 0x2db   :  { %v2403_v26 = vpop.f32.mrf.mxu0  ;;  %v2472_v29 = vpop.f32.mrf.mxu1 }
 0x2dc   :  { %v2478_v6 = vadd.f32 %v2403_v26, %v2327_v60  ;;  %v2479_v22 = vadd.f32 %v2472_v29, %v2328_v41 }
 0x2dd   :  { %v2568_v18 = vpop.f32.mrf.mxu0  ;;  %v2474_v44 = vpop.f32.mrf.mxu1 }
 0x2de   :  { %v2644_v62 = vadd.f32 %v2568_v18, %v2477_v24  ;;  %v2480_v30 = vadd.f32 %v2474_v44, %v2329_v12 }
 0x2df   :  { %v2570_v11 = vpop.f32.mrf.mxu0  ;;  %v2639_v20 = vpop.f32.mrf.mxu1 }
 0x2e0   :  { %v2645_v39 = vadd.f32 %v2570_v11, %v2478_v6  ;;  %v2646_v14 = vadd.f32 %v2639_v20, %v2479_v22 }
 0x2e1   :  { %v2641_v42 = vpop.f32.mrf.mxu1 }
 0x2e2   :  { %v2735_v2 = vpop.f32.mrf.mxu0  ;;  %v2647_v57 = vadd.f32 %v2641_v42, %v2480_v30 }
 0x2e3   :  { %v2811_v40 = vadd.f32 %v2735_v2, %v2644_v62 }
 0x2e4   :  { %v2737_v0 = vpop.f32.mrf.mxu0 }
 0x2e5   :  { %v2812_v50 = vadd.f32 %v2737_v0, %v2645_v39 }
 0x2e6   :  { %v2806_v43 = vpop.f32.mrf.mxu1 }
 0x2e7   :  { %v2813_v36 = vadd.f32 %v2806_v43, %v2646_v14 }
 0x2e8   :  { %v2808_v37 = vpop.f32.mrf.mxu1 }
 0x2e9   :  { %v2814_v19 = vadd.f32 %v2808_v37, %v2647_v57 }
 0x2ea   :  { %v2902_v63 = vpop.f32.mrf.mxu0 }
 0x2eb   :  { %v2978_v13 = vadd.f32 %v2902_v63, %v2811_v40 }
 0x2ec   :  { %v2904_v16 = vpop.f32.mrf.mxu0 }
 0x2ed   :  { %v2979_v35 = vadd.f32 %v2904_v16, %v2812_v50 }
 0x2ee   :  { %v2973_v38 = vpop.f32.mrf.mxu1 }
 0x2ef   :  { %v2980_v3 = vadd.f32 %v2973_v38, %v2813_v36 }
 0x2f0   :  { %v2975_v58 = vpop.f32.mrf.mxu1 }
 0x2f1   :  { %v2981_v17 = vadd.f32 %v2975_v58, %v2814_v19 }
 0x2f2   :  { %v3069_v31 = vpop.f32.mrf.mxu0 }
 0x2f3   :  { %v3145_v55 = vadd.f32 %v3069_v31, %v2978_v13 }
 0x2f4   :  { %v3071_v51 = vpop.f32.mrf.mxu0 }
 0x2f5   :  { %v3155_v34 = vadd.f32 %v3153_v47, %v3145_v55  ;;  %v3146_v15 = vadd.f32 %v3071_v51, %v2979_v35 }
 0x2f6   :  { %v3140_v49 = vpop.f32.mrf.mxu1 }
 0x2f7   :  { %vm3159_vm13 = vcmp.ge.f32.partialorder %v3155_v34, 0.0  ;;  %v3163_v52 = vmul.f32 0.01, %v3155_v34  ;;  %v3156_v1 = vadd.f32 %v3153_v47, %v3146_v15  ;;  %v3147_v56 = vadd.f32 %v3140_v49, %v2980_v3 }
 0x2f8   :  { %v3142_v53 = vpop.f32.mrf.mxu1 }
 0x2f9   :  { %v3167_v9 = vsel %vm3159_vm13, %v3155_v34, %v3163_v52  ;;  %vm3160_vm14 = vcmp.ge.f32.partialorder %v3156_v1, 0.0  ;;  %v3164_v54 = vmul.f32 0.01, %v3156_v1  ;;  %v3157_v25 = vadd.f32 %v3153_v47, %v3147_v56 }
 0x2fa   :  { %3171 = vst [vmem:[#allocation2] sm:$0xff] %v3167_v9  ;;  %v3148_v28 = vadd.f32 %v3142_v53, %v2981_v17 }
 0x2fb   :  { %v3168_v27 = vsel %vm3160_vm14, %v3156_v1, %v3164_v54  ;;  %vm3161_vm15 = vcmp.ge.f32.partialorder %v3157_v25, 0.0  ;;  %v3165_v23 = vmul.f32 0.01, %v3157_v25 }
 0x2fc   :  { %3172 = vst [vmem:[#allocation2 + $0x8] sm:$0xff] %v3168_v27  ;;  %v3158_v48 = vadd.f32 %v3153_v47, %v3148_v28 }
 0x2fd   :  { %v3169_v45 = vsel %vm3161_vm15, %v3157_v25, %v3165_v23 }
 0x2fe   :  { %3173 = vst [vmem:[#allocation2 + $0x10] sm:$0xff] %v3169_v45  ;;  %vm3162_vm0 = vcmp.ge.f32.partialorder %v3158_v48, 0.0  ;;  %v3166_v33 = vmul.f32 0.01, %v3158_v48 }
 0x300   :  { %v3170_v32 = vsel %vm3162_vm0, %v3158_v48, %v3166_v33 }
 0x301   :  { %3174 = vst [vmem:[#allocation2 + $0x18] sm:$0xff] %v3170_v32 }
 0x302   :  { %3264 = shalt.err (!%p3261_p4)
}
 0x303   :  { %3184 = dma.vmem_to_hbm [thread:$0]  %s3182_s12, 512, %s3954_s6, [#allocation3]  }
 0x304   :  { %3273 = dma.done.wait [#allocation3], 512  }
 0x305   :  { %3274 = vsyncadd [#allocation3], 4294966784 }
 0x306   :  { %3188 = vsyncpa [#allocation3], 1 }

</bundles_post_ra>
